<compile_context>
chip_gen: v7x
topology: tpu7x:2x2x1
jax: 0.10.0
libtpu: 0.0.40
codegen_flags: <defaults>
</compile_context>

<pallas_src>
import functools

import jax
import jax.numpy as jnp
import numpy as np
from jax.experimental import pallas as pl
from jax.experimental.pallas import tpu as pltpu


def _spatial_attn_kernel(x_ref, w_ref, mask_ref, o_ref,
                         sum_sc, max_sc, pad_a_sc, pad_m_sc,
                         *, K, W, HW, front, base):
    """One (batch-block, channel-block) grid step.

    x_ref    : (bn, ct, HW)   VMEM  lane-dense flattened input block
    w_ref    : (2, K*K)       SMEM  conv taps (avg row pre-scaled by 1/C)
    mask_ref : (K, HW)        VMEM  per-dx column-validity masks (0/1 f32)
    o_ref    : (bn, HW)       VMEM  lane-dense output block (written at last c)
    sum_sc / max_sc     : (bn, HW)    f32 running channel sum / max
    pad_a_sc / pad_m_sc : (bn, Lpad)  f32 row-padded planes for the conv
    """
    c_idx = pl.program_id(1)
    last_c = pl.num_programs(1) - 1

    # ---- channel-block reduction (hot path: runs every grid step) ----
    xb = x_ref[...]                                      # native dtype, no f32 copy
    blk_sum = jnp.sum(xb, axis=1, dtype=jnp.float32)     # (bn, HW) f32 accumulate
    blk_max = jnp.max(xb, axis=1).astype(jnp.float32)    # (bn, HW)

    @pl.when(c_idx == 0)
    def _init():
        sum_sc[...] = blk_sum
        max_sc[...] = blk_max

    @pl.when(c_idx != 0)
    def _accumulate():
        sum_sc[...] = sum_sc[...] + blk_sum
        max_sc[...] = jnp.maximum(max_sc[...], blk_max)

    # ---- conv(2 -> 1, KxK, "same") + sigmoid on the final channel step ----
    @pl.when(c_idx == last_c)
    def _finalize():
        # Row-padded planes in VMEM scratch: zero borders absorb the dy
        # (height) overflow; the interior store offset `front` is a multiple
        # of 128 so it is a lane-aligned store.
        pad_a_sc[...] = jnp.zeros_like(pad_a_sc)
        pad_m_sc[...] = jnp.zeros_like(pad_m_sc)
        pad_a_sc[:, front:front + HW] = sum_sc[...]      # 1/C folded into w_ref[0]
        pad_m_sc[:, front:front + HW] = max_sc[...]

        # Hoist all 2*K*K SMEM scalar weight reads out of the MAC loops.
        w_a = [[w_ref[0, dy * K + dx] for dx in range(K)] for dy in range(K)]
        w_m = [[w_ref[1, dy * K + dx] for dx in range(K)] for dy in range(K)]

        # Flat-layout "same" conv: tap (dy, dx) of output pixel p sits at
        # flat offset base + dy*W + dx + p in the padded plane.  Each tap is
        # a bounded-live-range VMEM ref slice load; the dx (width) boundary
        # is one multiply by a precomputed column mask per dx.
        # TODO(synk): for W >= 128 use banded (W, W) MXU matmuls per dy here.
        sum_sc[...] = jnp.zeros_like(sum_sc)             # reuse as conv accumulator
        for dx in range(K):
            part = jnp.zeros(sum_sc.shape, jnp.float32)
            for dy in range(K):
                off = base + dy * W + dx
                part = part + pad_a_sc[:, off:off + HW] * w_a[dy][dx]
                part = part + pad_m_sc[:, off:off + HW] * w_m[dy][dx]
            sum_sc[...] = sum_sc[...] + part * mask_ref[dx:dx + 1, :]

        o_ref[...] = jax.nn.sigmoid(sum_sc[...]).astype(o_ref.dtype)


def _pick_ct(C, cap):
    """Channel tile: a multiple of 8 (sublane-aligned block dim) or full C."""
    cands = sorted({d for d in range(8, C + 1, 8) if C % d == 0} | {C})
    fitting = [d for d in cands if d <= max(1, cap)]
    return fitting[-1] if fitting else cands[0]


def _pick_bn(N):
    """Batch fold: 8 rows fill a vreg's sublanes; keeps grid[0] >= 2 when
    N >= 16 (both v7x TensorCores).  Otherwise the full batch (always a legal
    full-dim block)."""
    if N % 8 == 0 and N > 8:
        return 8
    return N


def spatial_attention(x, w, *, block_bytes=8 * 1024 * 1024,
                      vmem_limit_bytes=48 * 1024 * 1024):
    """CBAM SpatialAttention forward.

    x: (N, C, H, W); w: (1, 2, K, K) OIHW conv weight (no bias) -> (N, 1, H, W).

    block_bytes caps the per-grid-step input block (double-buffered by the
    pipeline).  The 8 MiB / 48 MiB defaults suit v7x (64 MiB physical VMEM)
    and v6e; on v5e ~2-4 MiB blocks already amortize the per-step overhead,
    and on v6e both can be raised further (128 MiB physical VMEM).
    """
    N, C, H, W = x.shape
    K = w.shape[-1]
    P = K // 2
    HW = H * W

    # Lane-dense layout: flatten spatial dims so the last BlockSpec dim is
    # H*W (>= 128 for typical CBAM maps) instead of W.
    x_flat = x.reshape(N, C, HW)

    # Conv taps to SMEM; fold the 1/C channel-mean scale into the avg taps.
    w2 = w.reshape(2, K * K).astype(jnp.float32)
    w2 = w2 * jnp.array([[1.0 / C], [1.0]], jnp.float32)

    # Host-precomputed per-dx column-validity masks for the flat-layout conv.
    col = np.arange(HW) % W
    col_mask = jnp.asarray(np.stack(
        [((col + dx - P >= 0) & (col + dx - P < W)).astype(np.float32)
         for dx in range(K)]))                               # (K, HW)

    # Row-padded plane geometry: tap (0, 0) reaches P*(W+1) elements before
    # pixel 0; round the interior offset up to a 128-lane-aligned boundary.
    reach = P * (W + 1)
    front = 128 * ((reach + 127) // 128)
    base = front - reach
    l_pad = front + HW + reach

    bn = _pick_bn(N)
    itemsize = jnp.dtype(x.dtype).itemsize
    ct = _pick_ct(C, block_bytes // max(1, bn * HW * itemsize))

    kernel = functools.partial(_spatial_attn_kernel, K=K, W=W, HW=HW,
                               front=front, base=base)
    out_flat = pl.pallas_call(
        kernel,
        out_shape=jax.ShapeDtypeStruct((N, HW), x.dtype),
        grid=(N // bn, C // ct),
        in_specs=[
            pl.BlockSpec((bn, ct, HW), lambda n, c: (n, c, 0)),
            pl.BlockSpec(memory_space=pltpu.MemorySpace.SMEM),   # conv taps
            pl.BlockSpec((K, HW), lambda n, c: (0, 0)),          # column masks
        ],
        out_specs=pl.BlockSpec((bn, HW), lambda n, c: (n, 0)),
        scratch_shapes=[
            pltpu.VMEM((bn, HW), jnp.float32),      # running channel sum / conv acc
            pltpu.VMEM((bn, HW), jnp.float32),      # running channel max
            pltpu.VMEM((bn, l_pad), jnp.float32),   # row-padded avg plane
            pltpu.VMEM((bn, l_pad), jnp.float32),   # row-padded max plane
        ],
        compiler_params=pltpu.CompilerParams(
            # Batch axis feeds both TensorCores (v7x megacore); channel axis
            # is the reduction and stays sequential (and last).
            dimension_semantics=("parallel", "arbitrary"),
            # Explicit headroom over the v5e 16 MiB scoped default, within
            # the v7x 64 MiB physical VMEM.
            vmem_limit_bytes=vmem_limit_bytes,
        ),
    )(x_flat, w2, col_mask)
    return out_flat.reshape(N, 1, H, W)


def _reference(x, w):
    avg = jnp.mean(x, axis=1, keepdims=True)
    mx = jnp.max(x, axis=1, keepdims=True)
    xc = jnp.concatenate([avg, mx], axis=1)
    p = w.shape[-1] // 2
    out = jax.lax.conv_general_dilated(
        xc, w, window_strides=(1, 1), padding=[(p, p), (p, p)],
        dimension_numbers=("NCHW", "OIHW", "NCHW"))
    return jax.nn.sigmoid(out)


if __name__ == "__main__":
    key = jax.random.PRNGKey(0)
    kx, kw, kx2, kx3 = jax.random.split(key, 4)

    K = 7
    fan_in = 2 * K * K
    bound = 1.0 / (fan_in ** 0.5)
    # Deterministic init matching nn.Conv2d(2, 1, 7, bias=False) weight shape.
    w = jax.random.uniform(kw, (1, 2, K, K), jnp.float32, -bound, bound)

    # Base case: batch=2, channels=4, 16x16 feature map (whole-C block).
    x = jax.random.normal(kx, (2, 4, 16, 16), dtype=jnp.float32)
    out = spatial_attention(x, w)
    jax.block_until_ready(out)
    assert out.shape == (2, 1, 16, 16)
    assert jnp.allclose(out, _reference(x, w), atol=1e-5, rtol=1e-5)

    # Channel-tiled accumulator path (grid = (1, 2)): small per-step budget.
    x2 = jax.random.normal(kx2, (2, 16, 16, 16), dtype=jnp.float32)
    out2 = spatial_attention(x2, w, block_bytes=16 * 1024)
    jax.block_until_ready(out2)
    assert jnp.allclose(out2, _reference(x2, w), atol=1e-5, rtol=1e-5)

    # Batch-parallel axis with >= 2 steps (feeds both TensorCores on v7x).
    x3 = jax.random.normal(kx3, (16, 8, 16, 16), dtype=jnp.float32)
    out3 = spatial_attention(x3, w)
    jax.block_until_ready(out3)
    assert jnp.allclose(out3, _reference(x3, w), atol=1e-5, rtol=1e-5)

    print("KERNEL_OK")
</pallas_src>

<mosaic_0001>
module attributes {stable_mosaic.version = 11 : i64} {
  func.func @_spatial_attn_kernel(%arg0: i32, %arg1: i32, %arg2: memref<2x4x256xf32, #tpu.memory_space<vmem>>, %arg3: memref<2x49xf32, #tpu.memory_space<smem>>, %arg4: memref<7x256xf32, #tpu.memory_space<vmem>>, %arg5: memref<2x256xf32, #tpu.memory_space<vmem>>, %arg6: memref<2x256xf32, #tpu.memory_space<vmem>>, %arg7: memref<2x256xf32, #tpu.memory_space<vmem>>, %arg8: memref<2x435xf32, #tpu.memory_space<vmem>>, %arg9: memref<2x435xf32, #tpu.memory_space<vmem>>) attributes {dimension_semantics = [#tpu.dimension_semantics<parallel>, #tpu.dimension_semantics<arbitrary>], iteration_bounds = array<i64: 1, 1>, scalar_prefetch = 0 : i64, scratch_operands = 4 : i64, tpu.core_type = #tpu.core_type<tc>, window_params = [{transform_indices = @transform_0, window_bounds = array<i64: 2, 4, 256>}, {transform_indices = @transform_1, window_bounds = array<i64: 2, 49>}, {pipeline_mode = #tpu.pipeline_mode<synchronous>, transform_indices = @transform_2, window_bounds = array<i64: 7, 256>}, {transform_indices = @transform_3, window_bounds = array<i64: 2, 256>}]} {
    %c0 = arith.constant 0 : index
    %c0_0 = arith.constant 0 : index
    %c0_1 = arith.constant 0 : index
    %0 = vector.load %arg2[%c0, %c0_0, %c0_1] : memref<2x4x256xf32, #tpu.memory_space<vmem>>, vector<2x4x256xf32>
    %cst = arith.constant dense<0.000000e+00> : vector<2x256xf32>
    %1 = vector.multi_reduction <add>, %0, %cst [1] : vector<2x4x256xf32> to vector<2x256xf32>
    %cst_2 = arith.constant dense<0xFF800000> : vector<2x256xf32>
    %2 = vector.multi_reduction <maximumf>, %0, %cst_2 [1] : vector<2x4x256xf32> to vector<2x256xf32>
    %c0_i32 = arith.constant 0 : i32
    %3 = arith.cmpi eq, %arg1, %c0_i32 : i32
    %4 = arith.extui %3 : i1 to i32
    %c0_i32_3 = arith.constant 0 : i32
    %5 = arith.cmpi ne, %4, %c0_i32_3 : i32
    scf.if %5 {
      %c0_8 = arith.constant 0 : index
      %c0_9 = arith.constant 0 : index
      %12 = vector.load %arg6[%c0_8, %c0_9] : memref<2x256xf32, #tpu.memory_space<vmem>>, vector<2x256xf32>
      tpu.vector_store %arg6[%c0_8, %c0_9], %1 {strides = array<i32>} : memref<2x256xf32, #tpu.memory_space<vmem>>, vector<2x256xf32>,
      %c0_10 = arith.constant 0 : index
      %c0_11 = arith.constant 0 : index
      %13 = vector.load %arg7[%c0_10, %c0_11] : memref<2x256xf32, #tpu.memory_space<vmem>>, vector<2x256xf32>
      tpu.vector_store %arg7[%c0_10, %c0_11], %2 {strides = array<i32>} : memref<2x256xf32, #tpu.memory_space<vmem>>, vector<2x256xf32>,
    } else {
    }
    %c0_i32_4 = arith.constant 0 : i32
    %6 = arith.cmpi ne, %arg1, %c0_i32_4 : i32
    %7 = arith.extui %6 : i1 to i32
    %c0_i32_5 = arith.constant 0 : i32
    %8 = arith.cmpi ne, %7, %c0_i32_5 : i32
    scf.if %8 {
      %c0_8 = arith.constant 0 : index
      %c0_9 = arith.constant 0 : index
      %12 = vector.load %arg6[%c0_8, %c0_9] : memref<2x256xf32, #tpu.memory_space<vmem>>, vector<2x256xf32>
      %13 = arith.addf %12, %1 : vector<2x256xf32>
      %c0_10 = arith.constant 0 : index
      %c0_11 = arith.constant 0 : index
      %14 = vector.load %arg6[%c0_10, %c0_11] : memref<2x256xf32, #tpu.memory_space<vmem>>, vector<2x256xf32>
      tpu.vector_store %arg6[%c0_10, %c0_11], %13 {strides = array<i32>} : memref<2x256xf32, #tpu.memory_space<vmem>>, vector<2x256xf32>,
      %c0_12 = arith.constant 0 : index
      %c0_13 = arith.constant 0 : index
      %15 = vector.load %arg7[%c0_12, %c0_13] : memref<2x256xf32, #tpu.memory_space<vmem>>, vector<2x256xf32>
      %16 = arith.maximumf %15, %2 : vector<2x256xf32>
      %c0_14 = arith.constant 0 : index
      %c0_15 = arith.constant 0 : index
      %17 = vector.load %arg7[%c0_14, %c0_15] : memref<2x256xf32, #tpu.memory_space<vmem>>, vector<2x256xf32>
      tpu.vector_store %arg7[%c0_14, %c0_15], %16 {strides = array<i32>} : memref<2x256xf32, #tpu.memory_space<vmem>>, vector<2x256xf32>,
    } else {
    }
    %c0_i32_6 = arith.constant 0 : i32
    %9 = arith.cmpi eq, %arg1, %c0_i32_6 : i32
    %10 = arith.extui %9 : i1 to i32
    %c0_i32_7 = arith.constant 0 : i32
    %11 = arith.cmpi ne, %10, %c0_i32_7 : i32
    scf.if %11 {
      %cst_8 = arith.constant 0.000000e+00 : f32
      %12 = vector.broadcast %cst_8 : f32 to vector<2x435xf32>
      %c0_9 = arith.constant 0 : index
      %c0_10 = arith.constant 0 : index
      %13 = vector.load %arg8[%c0_9, %c0_10] : memref<2x435xf32, #tpu.memory_space<vmem>>, vector<2x435xf32>
      tpu.vector_store %arg8[%c0_9, %c0_10], %12 {strides = array<i32>} : memref<2x435xf32, #tpu.memory_space<vmem>>, vector<2x435xf32>,
      %cst_11 = arith.constant 0.000000e+00 : f32
      %14 = vector.broadcast %cst_11 : f32 to vector<2x435xf32>
      %c0_12 = arith.constant 0 : index
      %c0_13 = arith.constant 0 : index
      %15 = vector.load %arg9[%c0_12, %c0_13] : memref<2x435xf32, #tpu.memory_space<vmem>>, vector<2x435xf32>
      tpu.vector_store %arg9[%c0_12, %c0_13], %14 {strides = array<i32>} : memref<2x435xf32, #tpu.memory_space<vmem>>, vector<2x435xf32>,
      %c0_14 = arith.constant 0 : index
      %c0_15 = arith.constant 0 : index
      %16 = vector.load %arg6[%c0_14, %c0_15] : memref<2x256xf32, #tpu.memory_space<vmem>>, vector<2x256xf32>
      %c0_16 = arith.constant 0 : index
      %c128 = arith.constant 128 : index
      %17 = vector.load %arg8[%c0_16, %c128] : memref<2x435xf32, #tpu.memory_space<vmem>>, vector<2x256xf32>
      tpu.vector_store %arg8[%c0_16, %c128], %16 {strides = array<i32>} : memref<2x435xf32, #tpu.memory_space<vmem>>, vector<2x256xf32>,
      %c0_17 = arith.constant 0 : index
      %c0_18 = arith.constant 0 : index
      %18 = vector.load %arg7[%c0_17, %c0_18] : memref<2x256xf32, #tpu.memory_space<vmem>>, vector<2x256xf32>
      %c0_19 = arith.constant 0 : index
      %c128_20 = arith.constant 128 : index
      %19 = vector.load %arg9[%c0_19, %c128_20] : memref<2x435xf32, #tpu.memory_space<vmem>>, vector<2x256xf32>
      tpu.vector_store %arg9[%c0_19, %c128_20], %18 {strides = array<i32>} : memref<2x435xf32, #tpu.memory_space<vmem>>, vector<2x256xf32>,
      %c0_21 = arith.constant 0 : index
      %c0_22 = arith.constant 0 : index
      %20 = memref.load %arg3[%c0_21, %c0_22] : memref<2x49xf32, #tpu.memory_space<smem>>
      %c0_23 = arith.constant 0 : index
      %c1 = arith.constant 1 : index
      %21 = memref.load %arg3[%c0_23, %c1] : memref<2x49xf32, #tpu.memory_space<smem>>
      %c0_24 = arith.constant 0 : index
      %c2 = arith.constant 2 : index
      %22 = memref.load %arg3[%c0_24, %c2] : memref<2x49xf32, #tpu.memory_space<smem>>
      %c0_25 = arith.constant 0 : index
      %c3 = arith.constant 3 : index
      %23 = memref.load %arg3[%c0_25, %c3] : memref<2x49xf32, #tpu.memory_space<smem>>
      %c0_26 = arith.constant 0 : index
      %c4 = arith.constant 4 : index
      %24 = memref.load %arg3[%c0_26, %c4] : memref<2x49xf32, #tpu.memory_space<smem>>
      %c0_27 = arith.constant 0 : index
      %c5 = arith.constant 5 : index
      %25 = memref.load %arg3[%c0_27, %c5] : memref<2x49xf32, #tpu.memory_space<smem>>
      %c0_28 = arith.constant 0 : index
      %c6 = arith.constant 6 : index
      %26 = memref.load %arg3[%c0_28, %c6] : memref<2x49xf32, #tpu.memory_space<smem>>
      %c0_29 = arith.constant 0 : index
      %c7 = arith.constant 7 : index
      %27 = memref.load %arg3[%c0_29, %c7] : memref<2x49xf32, #tpu.memory_space<smem>>
      %c0_30 = arith.constant 0 : index
      %c8 = arith.constant 8 : index
      %28 = memref.load %arg3[%c0_30, %c8] : memref<2x49xf32, #tpu.memory_space<smem>>
      %c0_31 = arith.constant 0 : index
      %c9 = arith.constant 9 : index
      %29 = memref.load %arg3[%c0_31, %c9] : memref<2x49xf32, #tpu.memory_space<smem>>
      %c0_32 = arith.constant 0 : index
      %c10 = arith.constant 10 : index
      %30 = memref.load %arg3[%c0_32, %c10] : memref<2x49xf32, #tpu.memory_space<smem>>
      %c0_33 = arith.constant 0 : index
      %c11 = arith.constant 11 : index
      %31 = memref.load %arg3[%c0_33, %c11] : memref<2x49xf32, #tpu.memory_space<smem>>
      %c0_34 = arith.constant 0 : index
      %c12 = arith.constant 12 : index
      %32 = memref.load %arg3[%c0_34, %c12] : memref<2x49xf32, #tpu.memory_space<smem>>
      %c0_35 = arith.constant 0 : index
      %c13 = arith.constant 13 : index
      %33 = memref.load %arg3[%c0_35, %c13] : memref<2x49xf32, #tpu.memory_space<smem>>
      %c0_36 = arith.constant 0 : index
      %c14 = arith.constant 14 : index
      %34 = memref.load %arg3[%c0_36, %c14] : memref<2x49xf32, #tpu.memory_space<smem>>
      %c0_37 = arith.constant 0 : index
      %c15 = arith.constant 15 : index
      %35 = memref.load %arg3[%c0_37, %c15] : memref<2x49xf32, #tpu.memory_space<smem>>
      %c0_38 = arith.constant 0 : index
      %c16 = arith.constant 16 : index
      %36 = memref.load %arg3[%c0_38, %c16] : memref<2x49xf32, #tpu.memory_space<smem>>
      %c0_39 = arith.constant 0 : index
      %c17 = arith.constant 17 : index
      %37 = memref.load %arg3[%c0_39, %c17] : memref<2x49xf32, #tpu.memory_space<smem>>
      %c0_40 = arith.constant 0 : index
      %c18 = arith.constant 18 : index
      %38 = memref.load %arg3[%c0_40, %c18] : memref<2x49xf32, #tpu.memory_space<smem>>
      %c0_41 = arith.constant 0 : index
      %c19 = arith.constant 19 : index
      %39 = memref.load %arg3[%c0_41, %c19] : memref<2x49xf32, #tpu.memory_space<smem>>
      %c0_42 = arith.constant 0 : index
      %c20 = arith.constant 20 : index
      %40 = memref.load %arg3[%c0_42, %c20] : memref<2x49xf32, #tpu.memory_space<smem>>
      %c0_43 = arith.constant 0 : index
      %c21 = arith.constant 21 : index
      %41 = memref.load %arg3[%c0_43, %c21] : memref<2x49xf32, #tpu.memory_space<smem>>
      %c0_44 = arith.constant 0 : index
      %c22 = arith.constant 22 : index
      %42 = memref.load %arg3[%c0_44, %c22] : memref<2x49xf32, #tpu.memory_space<smem>>
      %c0_45 = arith.constant 0 : index
      %c23 = arith.constant 23 : index
      %43 = memref.load %arg3[%c0_45, %c23] : memref<2x49xf32, #tpu.memory_space<smem>>
      %c0_46 = arith.constant 0 : index
      %c24 = arith.constant 24 : index
      %44 = memref.load %arg3[%c0_46, %c24] : memref<2x49xf32, #tpu.memory_space<smem>>
      %c0_47 = arith.constant 0 : index
      %c25 = arith.constant 25 : index
      %45 = memref.load %arg3[%c0_47, %c25] : memref<2x49xf32, #tpu.memory_space<smem>>
      %c0_48 = arith.constant 0 : index
      %c26 = arith.constant 26 : index
      %46 = memref.load %arg3[%c0_48, %c26] : memref<2x49xf32, #tpu.memory_space<smem>>
      %c0_49 = arith.constant 0 : index
      %c27 = arith.constant 27 : index
      %47 = memref.load %arg3[%c0_49, %c27] : memref<2x49xf32, #tpu.memory_space<smem>>
      %c0_50 = arith.constant 0 : index
      %c28 = arith.constant 28 : index
      %48 = memref.load %arg3[%c0_50, %c28] : memref<2x49xf32, #tpu.memory_space<smem>>
      %c0_51 = arith.constant 0 : index
      %c29 = arith.constant 29 : index
      %49 = memref.load %arg3[%c0_51, %c29] : memref<2x49xf32, #tpu.memory_space<smem>>
      %c0_52 = arith.constant 0 : index
      %c30 = arith.constant 30 : index
      %50 = memref.load %arg3[%c0_52, %c30] : memref<2x49xf32, #tpu.memory_space<smem>>
      %c0_53 = arith.constant 0 : index
      %c31 = arith.constant 31 : index
      %51 = memref.load %arg3[%c0_53, %c31] : memref<2x49xf32, #tpu.memory_space<smem>>
      %c0_54 = arith.constant 0 : index
      %c32 = arith.constant 32 : index
      %52 = memref.load %arg3[%c0_54, %c32] : memref<2x49xf32, #tpu.memory_space<smem>>
      %c0_55 = arith.constant 0 : index
      %c33 = arith.constant 33 : index
      %53 = memref.load %arg3[%c0_55, %c33] : memref<2x49xf32, #tpu.memory_space<smem>>
      %c0_56 = arith.constant 0 : index
      %c34 = arith.constant 34 : index
      %54 = memref.load %arg3[%c0_56, %c34] : memref<2x49xf32, #tpu.memory_space<smem>>
      %c0_57 = arith.constant 0 : index
      %c35 = arith.constant 35 : index
      %55 = memref.load %arg3[%c0_57, %c35] : memref<2x49xf32, #tpu.memory_space<smem>>
      %c0_58 = arith.constant 0 : index
      %c36 = arith.constant 36 : index
      %56 = memref.load %arg3[%c0_58, %c36] : memref<2x49xf32, #tpu.memory_space<smem>>
      %c0_59 = arith.constant 0 : index
      %c37 = arith.constant 37 : index
      %57 = memref.load %arg3[%c0_59, %c37] : memref<2x49xf32, #tpu.memory_space<smem>>
      %c0_60 = arith.constant 0 : index
      %c38 = arith.constant 38 : index
      %58 = memref.load %arg3[%c0_60, %c38] : memref<2x49xf32, #tpu.memory_space<smem>>
      %c0_61 = arith.constant 0 : index
      %c39 = arith.constant 39 : index
      %59 = memref.load %arg3[%c0_61, %c39] : memref<2x49xf32, #tpu.memory_space<smem>>
      %c0_62 = arith.constant 0 : index
      %c40 = arith.constant 40 : index
      %60 = memref.load %arg3[%c0_62, %c40] : memref<2x49xf32, #tpu.memory_space<smem>>
      %c0_63 = arith.constant 0 : index
      %c41 = arith.constant 41 : index
      %61 = memref.load %arg3[%c0_63, %c41] : memref<2x49xf32, #tpu.memory_space<smem>>
      %c0_64 = arith.constant 0 : index
      %c42 = arith.constant 42 : index
      %62 = memref.load %arg3[%c0_64, %c42] : memref<2x49xf32, #tpu.memory_space<smem>>
      %c0_65 = arith.constant 0 : index
      %c43 = arith.constant 43 : index
      %63 = memref.load %arg3[%c0_65, %c43] : memref<2x49xf32, #tpu.memory_space<smem>>
      %c0_66 = arith.constant 0 : index
      %c44 = arith.constant 44 : index
      %64 = memref.load %arg3[%c0_66, %c44] : memref<2x49xf32, #tpu.memory_space<smem>>
      %c0_67 = arith.constant 0 : index
      %c45 = arith.constant 45 : index
      %65 = memref.load %arg3[%c0_67, %c45] : memref<2x49xf32, #tpu.memory_space<smem>>
      %c0_68 = arith.constant 0 : index
      %c46 = arith.constant 46 : index
      %66 = memref.load %arg3[%c0_68, %c46] : memref<2x49xf32, #tpu.memory_space<smem>>
      %c0_69 = arith.constant 0 : index
      %c47 = arith.constant 47 : index
      %67 = memref.load %arg3[%c0_69, %c47] : memref<2x49xf32, #tpu.memory_space<smem>>
      %c0_70 = arith.constant 0 : index
      %c48 = arith.constant 48 : index
      %68 = memref.load %arg3[%c0_70, %c48] : memref<2x49xf32, #tpu.memory_space<smem>>
      %c1_71 = arith.constant 1 : index
      %c0_72 = arith.constant 0 : index
      %69 = memref.load %arg3[%c1_71, %c0_72] : memref<2x49xf32, #tpu.memory_space<smem>>
      %c1_73 = arith.constant 1 : index
      %c1_74 = arith.constant 1 : index
      %70 = memref.load %arg3[%c1_73, %c1_74] : memref<2x49xf32, #tpu.memory_space<smem>>
      %c1_75 = arith.constant 1 : index
      %c2_76 = arith.constant 2 : index
      %71 = memref.load %arg3[%c1_75, %c2_76] : memref<2x49xf32, #tpu.memory_space<smem>>
      %c1_77 = arith.constant 1 : index
      %c3_78 = arith.constant 3 : index
      %72 = memref.load %arg3[%c1_77, %c3_78] : memref<2x49xf32, #tpu.memory_space<smem>>
      %c1_79 = arith.constant 1 : index
      %c4_80 = arith.constant 4 : index
      %73 = memref.load %arg3[%c1_79, %c4_80] : memref<2x49xf32, #tpu.memory_space<smem>>
      %c1_81 = arith.constant 1 : index
      %c5_82 = arith.constant 5 : index
      %74 = memref.load %arg3[%c1_81, %c5_82] : memref<2x49xf32, #tpu.memory_space<smem>>
      %c1_83 = arith.constant 1 : index
      %c6_84 = arith.constant 6 : index
      %75 = memref.load %arg3[%c1_83, %c6_84] : memref<2x49xf32, #tpu.memory_space<smem>>
      %c1_85 = arith.constant 1 : index
      %c7_86 = arith.constant 7 : index
      %76 = memref.load %arg3[%c1_85, %c7_86] : memref<2x49xf32, #tpu.memory_space<smem>>
      %c1_87 = arith.constant 1 : index
      %c8_88 = arith.constant 8 : index
      %77 = memref.load %arg3[%c1_87, %c8_88] : memref<2x49xf32, #tpu.memory_space<smem>>
      %c1_89 = arith.constant 1 : index
      %c9_90 = arith.constant 9 : index
      %78 = memref.load %arg3[%c1_89, %c9_90] : memref<2x49xf32, #tpu.memory_space<smem>>
      %c1_91 = arith.constant 1 : index
      %c10_92 = arith.constant 10 : index
      %79 = memref.load %arg3[%c1_91, %c10_92] : memref<2x49xf32, #tpu.memory_space<smem>>
      %c1_93 = arith.constant 1 : index
      %c11_94 = arith.constant 11 : index
      %80 = memref.load %arg3[%c1_93, %c11_94] : memref<2x49xf32, #tpu.memory_space<smem>>
      %c1_95 = arith.constant 1 : index
      %c12_96 = arith.constant 12 : index
      %81 = memref.load %arg3[%c1_95, %c12_96] : memref<2x49xf32, #tpu.memory_space<smem>>
      %c1_97 = arith.constant 1 : index
      %c13_98 = arith.constant 13 : index
      %82 = memref.load %arg3[%c1_97, %c13_98] : memref<2x49xf32, #tpu.memory_space<smem>>
      %c1_99 = arith.constant 1 : index
      %c14_100 = arith.constant 14 : index
      %83 = memref.load %arg3[%c1_99, %c14_100] : memref<2x49xf32, #tpu.memory_space<smem>>
      %c1_101 = arith.constant 1 : index
      %c15_102 = arith.constant 15 : index
      %84 = memref.load %arg3[%c1_101, %c15_102] : memref<2x49xf32, #tpu.memory_space<smem>>
      %c1_103 = arith.constant 1 : index
      %c16_104 = arith.constant 16 : index
      %85 = memref.load %arg3[%c1_103, %c16_104] : memref<2x49xf32, #tpu.memory_space<smem>>
      %c1_105 = arith.constant 1 : index
      %c17_106 = arith.constant 17 : index
      %86 = memref.load %arg3[%c1_105, %c17_106] : memref<2x49xf32, #tpu.memory_space<smem>>
      %c1_107 = arith.constant 1 : index
      %c18_108 = arith.constant 18 : index
      %87 = memref.load %arg3[%c1_107, %c18_108] : memref<2x49xf32, #tpu.memory_space<smem>>
      %c1_109 = arith.constant 1 : index
      %c19_110 = arith.constant 19 : index
      %88 = memref.load %arg3[%c1_109, %c19_110] : memref<2x49xf32, #tpu.memory_space<smem>>
      %c1_111 = arith.constant 1 : index
      %c20_112 = arith.constant 20 : index
      %89 = memref.load %arg3[%c1_111, %c20_112] : memref<2x49xf32, #tpu.memory_space<smem>>
      %c1_113 = arith.constant 1 : index
      %c21_114 = arith.constant 21 : index
      %90 = memref.load %arg3[%c1_113, %c21_114] : memref<2x49xf32, #tpu.memory_space<smem>>
      %c1_115 = arith.constant 1 : index
      %c22_116 = arith.constant 22 : index
      %91 = memref.load %arg3[%c1_115, %c22_116] : memref<2x49xf32, #tpu.memory_space<smem>>
      %c1_117 = arith.constant 1 : index
      %c23_118 = arith.constant 23 : index
      %92 = memref.load %arg3[%c1_117, %c23_118] : memref<2x49xf32, #tpu.memory_space<smem>>
      %c1_119 = arith.constant 1 : index
      %c24_120 = arith.constant 24 : index
      %93 = memref.load %arg3[%c1_119, %c24_120] : memref<2x49xf32, #tpu.memory_space<smem>>
      %c1_121 = arith.constant 1 : index
      %c25_122 = arith.constant 25 : index
      %94 = memref.load %arg3[%c1_121, %c25_122] : memref<2x49xf32, #tpu.memory_space<smem>>
      %c1_123 = arith.constant 1 : index
      %c26_124 = arith.constant 26 : index
      %95 = memref.load %arg3[%c1_123, %c26_124] : memref<2x49xf32, #tpu.memory_space<smem>>
      %c1_125 = arith.constant 1 : index
      %c27_126 = arith.constant 27 : index
      %96 = memref.load %arg3[%c1_125, %c27_126] : memref<2x49xf32, #tpu.memory_space<smem>>
      %c1_127 = arith.constant 1 : index
      %c28_128 = arith.constant 28 : index
      %97 = memref.load %arg3[%c1_127, %c28_128] : memref<2x49xf32, #tpu.memory_space<smem>>
      %c1_129 = arith.constant 1 : index
      %c29_130 = arith.constant 29 : index
      %98 = memref.load %arg3[%c1_129, %c29_130] : memref<2x49xf32, #tpu.memory_space<smem>>
      %c1_131 = arith.constant 1 : index
      %c30_132 = arith.constant 30 : index
      %99 = memref.load %arg3[%c1_131, %c30_132] : memref<2x49xf32, #tpu.memory_space<smem>>
      %c1_133 = arith.constant 1 : index
      %c31_134 = arith.constant 31 : index
      %100 = memref.load %arg3[%c1_133, %c31_134] : memref<2x49xf32, #tpu.memory_space<smem>>
      %c1_135 = arith.constant 1 : index
      %c32_136 = arith.constant 32 : index
      %101 = memref.load %arg3[%c1_135, %c32_136] : memref<2x49xf32, #tpu.memory_space<smem>>
      %c1_137 = arith.constant 1 : index
      %c33_138 = arith.constant 33 : index
      %102 = memref.load %arg3[%c1_137, %c33_138] : memref<2x49xf32, #tpu.memory_space<smem>>
      %c1_139 = arith.constant 1 : index
      %c34_140 = arith.constant 34 : index
      %103 = memref.load %arg3[%c1_139, %c34_140] : memref<2x49xf32, #tpu.memory_space<smem>>
      %c1_141 = arith.constant 1 : index
      %c35_142 = arith.constant 35 : index
      %104 = memref.load %arg3[%c1_141, %c35_142] : memref<2x49xf32, #tpu.memory_space<smem>>
      %c1_143 = arith.constant 1 : index
      %c36_144 = arith.constant 36 : index
      %105 = memref.load %arg3[%c1_143, %c36_144] : memref<2x49xf32, #tpu.memory_space<smem>>
      %c1_145 = arith.constant 1 : index
      %c37_146 = arith.constant 37 : index
      %106 = memref.load %arg3[%c1_145, %c37_146] : memref<2x49xf32, #tpu.memory_space<smem>>
      %c1_147 = arith.constant 1 : index
      %c38_148 = arith.constant 38 : index
      %107 = memref.load %arg3[%c1_147, %c38_148] : memref<2x49xf32, #tpu.memory_space<smem>>
      %c1_149 = arith.constant 1 : index
      %c39_150 = arith.constant 39 : index
      %108 = memref.load %arg3[%c1_149, %c39_150] : memref<2x49xf32, #tpu.memory_space<smem>>
      %c1_151 = arith.constant 1 : index
      %c40_152 = arith.constant 40 : index
      %109 = memref.load %arg3[%c1_151, %c40_152] : memref<2x49xf32, #tpu.memory_space<smem>>
      %c1_153 = arith.constant 1 : index
      %c41_154 = arith.constant 41 : index
      %110 = memref.load %arg3[%c1_153, %c41_154] : memref<2x49xf32, #tpu.memory_space<smem>>
      %c1_155 = arith.constant 1 : index
      %c42_156 = arith.constant 42 : index
      %111 = memref.load %arg3[%c1_155, %c42_156] : memref<2x49xf32, #tpu.memory_space<smem>>
      %c1_157 = arith.constant 1 : index
      %c43_158 = arith.constant 43 : index
      %112 = memref.load %arg3[%c1_157, %c43_158] : memref<2x49xf32, #tpu.memory_space<smem>>
      %c1_159 = arith.constant 1 : index
      %c44_160 = arith.constant 44 : index
      %113 = memref.load %arg3[%c1_159, %c44_160] : memref<2x49xf32, #tpu.memory_space<smem>>
      %c1_161 = arith.constant 1 : index
      %c45_162 = arith.constant 45 : index
      %114 = memref.load %arg3[%c1_161, %c45_162] : memref<2x49xf32, #tpu.memory_space<smem>>
      %c1_163 = arith.constant 1 : index
      %c46_164 = arith.constant 46 : index
      %115 = memref.load %arg3[%c1_163, %c46_164] : memref<2x49xf32, #tpu.memory_space<smem>>
      %c1_165 = arith.constant 1 : index
      %c47_166 = arith.constant 47 : index
      %116 = memref.load %arg3[%c1_165, %c47_166] : memref<2x49xf32, #tpu.memory_space<smem>>
      %c1_167 = arith.constant 1 : index
      %c48_168 = arith.constant 48 : index
      %117 = memref.load %arg3[%c1_167, %c48_168] : memref<2x49xf32, #tpu.memory_space<smem>>
      %cst_169 = arith.constant 0.000000e+00 : f32
      %118 = vector.broadcast %cst_169 : f32 to vector<2x256xf32>
      %c0_170 = arith.constant 0 : index
      %c0_171 = arith.constant 0 : index
      %119 = vector.load %arg6[%c0_170, %c0_171] : memref<2x256xf32, #tpu.memory_space<vmem>>, vector<2x256xf32>
      tpu.vector_store %arg6[%c0_170, %c0_171], %118 {strides = array<i32>} : memref<2x256xf32, #tpu.memory_space<vmem>>, vector<2x256xf32>,
      %cst_172 = arith.constant 0.000000e+00 : f32
      %120 = vector.broadcast %cst_172 : f32 to vector<2x256xf32>
      %c0_173 = arith.constant 0 : index
      %c77 = arith.constant 77 : index
      %121 = vector.load %arg8[%c0_173, %c77] : memref<2x435xf32, #tpu.memory_space<vmem>>, vector<2x256xf32>
      %122 = vector.broadcast %20 : f32 to vector<2x256xf32>
      %123 = arith.mulf %121, %122 : vector<2x256xf32>
      %124 = arith.addf %120, %123 : vector<2x256xf32>
      %c0_174 = arith.constant 0 : index
      %c77_175 = arith.constant 77 : index
      %125 = vector.load %arg9[%c0_174, %c77_175] : memref<2x435xf32, #tpu.memory_space<vmem>>, vector<2x256xf32>
      %126 = vector.broadcast %69 : f32 to vector<2x256xf32>
      %127 = arith.mulf %125, %126 : vector<2x256xf32>
      %128 = arith.addf %124, %127 : vector<2x256xf32>
      %c0_176 = arith.constant 0 : index
      %c93 = arith.constant 93 : index
      %129 = vector.load %arg8[%c0_176, %c93] : memref<2x435xf32, #tpu.memory_space<vmem>>, vector<2x256xf32>
      %130 = vector.broadcast %27 : f32 to vector<2x256xf32>
      %131 = arith.mulf %129, %130 : vector<2x256xf32>
      %132 = arith.addf %128, %131 : vector<2x256xf32>
      %c0_177 = arith.constant 0 : index
      %c93_178 = arith.constant 93 : index
      %133 = vector.load %arg9[%c0_177, %c93_178] : memref<2x435xf32, #tpu.memory_space<vmem>>, vector<2x256xf32>
      %134 = vector.broadcast %76 : f32 to vector<2x256xf32>
      %135 = arith.mulf %133, %134 : vector<2x256xf32>
      %136 = arith.addf %132, %135 : vector<2x256xf32>
      %c0_179 = arith.constant 0 : index
      %c109 = arith.constant 109 : index
      %137 = vector.load %arg8[%c0_179, %c109] : memref<2x435xf32, #tpu.memory_space<vmem>>, vector<2x256xf32>
      %138 = vector.broadcast %34 : f32 to vector<2x256xf32>
      %139 = arith.mulf %137, %138 : vector<2x256xf32>
      %140 = arith.addf %136, %139 : vector<2x256xf32>
      %c0_180 = arith.constant 0 : index
      %c109_181 = arith.constant 109 : index
      %141 = vector.load %arg9[%c0_180, %c109_181] : memref<2x435xf32, #tpu.memory_space<vmem>>, vector<2x256xf32>
      %142 = vector.broadcast %83 : f32 to vector<2x256xf32>
      %143 = arith.mulf %141, %142 : vector<2x256xf32>
      %144 = arith.addf %140, %143 : vector<2x256xf32>
      %c0_182 = arith.constant 0 : index
      %c125 = arith.constant 125 : index
      %145 = vector.load %arg8[%c0_182, %c125] : memref<2x435xf32, #tpu.memory_space<vmem>>, vector<2x256xf32>
      %146 = vector.broadcast %41 : f32 to vector<2x256xf32>
      %147 = arith.mulf %145, %146 : vector<2x256xf32>
      %148 = arith.addf %144, %147 : vector<2x256xf32>
      %c0_183 = arith.constant 0 : index
      %c125_184 = arith.constant 125 : index
      %149 = vector.load %arg9[%c0_183, %c125_184] : memref<2x435xf32, #tpu.memory_space<vmem>>, vector<2x256xf32>
      %150 = vector.broadcast %90 : f32 to vector<2x256xf32>
      %151 = arith.mulf %149, %150 : vector<2x256xf32>
      %152 = arith.addf %148, %151 : vector<2x256xf32>
      %c0_185 = arith.constant 0 : index
      %c141 = arith.constant 141 : index
      %153 = vector.load %arg8[%c0_185, %c141] : memref<2x435xf32, #tpu.memory_space<vmem>>, vector<2x256xf32>
      %154 = vector.broadcast %48 : f32 to vector<2x256xf32>
      %155 = arith.mulf %153, %154 : vector<2x256xf32>
      %156 = arith.addf %152, %155 : vector<2x256xf32>
      %c0_186 = arith.constant 0 : index
      %c141_187 = arith.constant 141 : index
      %157 = vector.load %arg9[%c0_186, %c141_187] : memref<2x435xf32, #tpu.memory_space<vmem>>, vector<2x256xf32>
      %158 = vector.broadcast %97 : f32 to vector<2x256xf32>
      %159 = arith.mulf %157, %158 : vector<2x256xf32>
      %160 = arith.addf %156, %159 : vector<2x256xf32>
      %c0_188 = arith.constant 0 : index
      %c157 = arith.constant 157 : index
      %161 = vector.load %arg8[%c0_188, %c157] : memref<2x435xf32, #tpu.memory_space<vmem>>, vector<2x256xf32>
      %162 = vector.broadcast %55 : f32 to vector<2x256xf32>
      %163 = arith.mulf %161, %162 : vector<2x256xf32>
      %164 = arith.addf %160, %163 : vector<2x256xf32>
      %c0_189 = arith.constant 0 : index
      %c157_190 = arith.constant 157 : index
      %165 = vector.load %arg9[%c0_189, %c157_190] : memref<2x435xf32, #tpu.memory_space<vmem>>, vector<2x256xf32>
      %166 = vector.broadcast %104 : f32 to vector<2x256xf32>
      %167 = arith.mulf %165, %166 : vector<2x256xf32>
      %168 = arith.addf %164, %167 : vector<2x256xf32>
      %c0_191 = arith.constant 0 : index
      %c173 = arith.constant 173 : index
      %169 = vector.load %arg8[%c0_191, %c173] : memref<2x435xf32, #tpu.memory_space<vmem>>, vector<2x256xf32>
      %170 = vector.broadcast %62 : f32 to vector<2x256xf32>
      %171 = arith.mulf %169, %170 : vector<2x256xf32>
      %172 = arith.addf %168, %171 : vector<2x256xf32>
      %c0_192 = arith.constant 0 : index
      %c173_193 = arith.constant 173 : index
      %173 = vector.load %arg9[%c0_192, %c173_193] : memref<2x435xf32, #tpu.memory_space<vmem>>, vector<2x256xf32>
      %174 = vector.broadcast %111 : f32 to vector<2x256xf32>
      %175 = arith.mulf %173, %174 : vector<2x256xf32>
      %176 = arith.addf %172, %175 : vector<2x256xf32>
      %c0_194 = arith.constant 0 : index
      %c0_195 = arith.constant 0 : index
      %177 = vector.load %arg6[%c0_194, %c0_195] : memref<2x256xf32, #tpu.memory_space<vmem>>, vector<2x256xf32>
      %c0_196 = arith.constant 0 : index
      %c0_197 = arith.constant 0 : index
      %178 = vector.load %arg4[%c0_196, %c0_197] : memref<7x256xf32, #tpu.memory_space<vmem>>, vector<1x256xf32>
      %179 = vector.broadcast %178 : vector<1x256xf32> to vector<2x256xf32>
      %180 = arith.mulf %176, %179 : vector<2x256xf32>
      %181 = arith.addf %177, %180 : vector<2x256xf32>
      %c0_198 = arith.constant 0 : index
      %c0_199 = arith.constant 0 : index
      %182 = vector.load %arg6[%c0_198, %c0_199] : memref<2x256xf32, #tpu.memory_space<vmem>>, vector<2x256xf32>
      tpu.vector_store %arg6[%c0_198, %c0_199], %181 {strides = array<i32>} : memref<2x256xf32, #tpu.memory_space<vmem>>, vector<2x256xf32>,
      %cst_200 = arith.constant 0.000000e+00 : f32
      %183 = vector.broadcast %cst_200 : f32 to vector<2x256xf32>
      %c0_201 = arith.constant 0 : index
      %c78 = arith.constant 78 : index
      %184 = vector.load %arg8[%c0_201, %c78] : memref<2x435xf32, #tpu.memory_space<vmem>>, vector<2x256xf32>
      %185 = vector.broadcast %21 : f32 to vector<2x256xf32>
      %186 = arith.mulf %184, %185 : vector<2x256xf32>
      %187 = arith.addf %183, %186 : vector<2x256xf32>
      %c0_202 = arith.constant 0 : index
      %c78_203 = arith.constant 78 : index
      %188 = vector.load %arg9[%c0_202, %c78_203] : memref<2x435xf32, #tpu.memory_space<vmem>>, vector<2x256xf32>
      %189 = vector.broadcast %70 : f32 to vector<2x256xf32>
      %190 = arith.mulf %188, %189 : vector<2x256xf32>
      %191 = arith.addf %187, %190 : vector<2x256xf32>
      %c0_204 = arith.constant 0 : index
      %c94 = arith.constant 94 : index
      %192 = vector.load %arg8[%c0_204, %c94] : memref<2x435xf32, #tpu.memory_space<vmem>>, vector<2x256xf32>
      %193 = vector.broadcast %28 : f32 to vector<2x256xf32>
      %194 = arith.mulf %192, %193 : vector<2x256xf32>
      %195 = arith.addf %191, %194 : vector<2x256xf32>
      %c0_205 = arith.constant 0 : index
      %c94_206 = arith.constant 94 : index
      %196 = vector.load %arg9[%c0_205, %c94_206] : memref<2x435xf32, #tpu.memory_space<vmem>>, vector<2x256xf32>
      %197 = vector.broadcast %77 : f32 to vector<2x256xf32>
      %198 = arith.mulf %196, %197 : vector<2x256xf32>
      %199 = arith.addf %195, %198 : vector<2x256xf32>
      %c0_207 = arith.constant 0 : index
      %c110 = arith.constant 110 : index
      %200 = vector.load %arg8[%c0_207, %c110] : memref<2x435xf32, #tpu.memory_space<vmem>>, vector<2x256xf32>
      %201 = vector.broadcast %35 : f32 to vector<2x256xf32>
      %202 = arith.mulf %200, %201 : vector<2x256xf32>
      %203 = arith.addf %199, %202 : vector<2x256xf32>
      %c0_208 = arith.constant 0 : index
      %c110_209 = arith.constant 110 : index
      %204 = vector.load %arg9[%c0_208, %c110_209] : memref<2x435xf32, #tpu.memory_space<vmem>>, vector<2x256xf32>
      %205 = vector.broadcast %84 : f32 to vector<2x256xf32>
      %206 = arith.mulf %204, %205 : vector<2x256xf32>
      %207 = arith.addf %203, %206 : vector<2x256xf32>
      %c0_210 = arith.constant 0 : index
      %c126 = arith.constant 126 : index
      %208 = vector.load %arg8[%c0_210, %c126] : memref<2x435xf32, #tpu.memory_space<vmem>>, vector<2x256xf32>
      %209 = vector.broadcast %42 : f32 to vector<2x256xf32>
      %210 = arith.mulf %208, %209 : vector<2x256xf32>
      %211 = arith.addf %207, %210 : vector<2x256xf32>
      %c0_211 = arith.constant 0 : index
      %c126_212 = arith.constant 126 : index
      %212 = vector.load %arg9[%c0_211, %c126_212] : memref<2x435xf32, #tpu.memory_space<vmem>>, vector<2x256xf32>
      %213 = vector.broadcast %91 : f32 to vector<2x256xf32>
      %214 = arith.mulf %212, %213 : vector<2x256xf32>
      %215 = arith.addf %211, %214 : vector<2x256xf32>
      %c0_213 = arith.constant 0 : index
      %c142 = arith.constant 142 : index
      %216 = vector.load %arg8[%c0_213, %c142] : memref<2x435xf32, #tpu.memory_space<vmem>>, vector<2x256xf32>
      %217 = vector.broadcast %49 : f32 to vector<2x256xf32>
      %218 = arith.mulf %216, %217 : vector<2x256xf32>
      %219 = arith.addf %215, %218 : vector<2x256xf32>
      %c0_214 = arith.constant 0 : index
      %c142_215 = arith.constant 142 : index
      %220 = vector.load %arg9[%c0_214, %c142_215] : memref<2x435xf32, #tpu.memory_space<vmem>>, vector<2x256xf32>
      %221 = vector.broadcast %98 : f32 to vector<2x256xf32>
      %222 = arith.mulf %220, %221 : vector<2x256xf32>
      %223 = arith.addf %219, %222 : vector<2x256xf32>
      %c0_216 = arith.constant 0 : index
      %c158 = arith.constant 158 : index
      %224 = vector.load %arg8[%c0_216, %c158] : memref<2x435xf32, #tpu.memory_space<vmem>>, vector<2x256xf32>
      %225 = vector.broadcast %56 : f32 to vector<2x256xf32>
      %226 = arith.mulf %224, %225 : vector<2x256xf32>
      %227 = arith.addf %223, %226 : vector<2x256xf32>
      %c0_217 = arith.constant 0 : index
      %c158_218 = arith.constant 158 : index
      %228 = vector.load %arg9[%c0_217, %c158_218] : memref<2x435xf32, #tpu.memory_space<vmem>>, vector<2x256xf32>
      %229 = vector.broadcast %105 : f32 to vector<2x256xf32>
      %230 = arith.mulf %228, %229 : vector<2x256xf32>
      %231 = arith.addf %227, %230 : vector<2x256xf32>
      %c0_219 = arith.constant 0 : index
      %c174 = arith.constant 174 : index
      %232 = vector.load %arg8[%c0_219, %c174] : memref<2x435xf32, #tpu.memory_space<vmem>>, vector<2x256xf32>
      %233 = vector.broadcast %63 : f32 to vector<2x256xf32>
      %234 = arith.mulf %232, %233 : vector<2x256xf32>
      %235 = arith.addf %231, %234 : vector<2x256xf32>
      %c0_220 = arith.constant 0 : index
      %c174_221 = arith.constant 174 : index
      %236 = vector.load %arg9[%c0_220, %c174_221] : memref<2x435xf32, #tpu.memory_space<vmem>>, vector<2x256xf32>
      %237 = vector.broadcast %112 : f32 to vector<2x256xf32>
      %238 = arith.mulf %236, %237 : vector<2x256xf32>
      %239 = arith.addf %235, %238 : vector<2x256xf32>
      %c0_222 = arith.constant 0 : index
      %c0_223 = arith.constant 0 : index
      %240 = vector.load %arg6[%c0_222, %c0_223] : memref<2x256xf32, #tpu.memory_space<vmem>>, vector<2x256xf32>
      %c1_224 = arith.constant 1 : index
      %c0_225 = arith.constant 0 : index
      %241 = vector.load %arg4[%c1_224, %c0_225] : memref<7x256xf32, #tpu.memory_space<vmem>>, vector<1x256xf32>
      %242 = vector.broadcast %241 : vector<1x256xf32> to vector<2x256xf32>
      %243 = arith.mulf %239, %242 : vector<2x256xf32>
      %244 = arith.addf %240, %243 : vector<2x256xf32>
      %c0_226 = arith.constant 0 : index
      %c0_227 = arith.constant 0 : index
      %245 = vector.load %arg6[%c0_226, %c0_227] : memref<2x256xf32, #tpu.memory_space<vmem>>, vector<2x256xf32>
      tpu.vector_store %arg6[%c0_226, %c0_227], %244 {strides = array<i32>} : memref<2x256xf32, #tpu.memory_space<vmem>>, vector<2x256xf32>,
      %cst_228 = arith.constant 0.000000e+00 : f32
      %246 = vector.broadcast %cst_228 : f32 to vector<2x256xf32>
      %c0_229 = arith.constant 0 : index
      %c79 = arith.constant 79 : index
      %247 = vector.load %arg8[%c0_229, %c79] : memref<2x435xf32, #tpu.memory_space<vmem>>, vector<2x256xf32>
      %248 = vector.broadcast %22 : f32 to vector<2x256xf32>
      %249 = arith.mulf %247, %248 : vector<2x256xf32>
      %250 = arith.addf %246, %249 : vector<2x256xf32>
      %c0_230 = arith.constant 0 : index
      %c79_231 = arith.constant 79 : index
      %251 = vector.load %arg9[%c0_230, %c79_231] : memref<2x435xf32, #tpu.memory_space<vmem>>, vector<2x256xf32>
      %252 = vector.broadcast %71 : f32 to vector<2x256xf32>
      %253 = arith.mulf %251, %252 : vector<2x256xf32>
      %254 = arith.addf %250, %253 : vector<2x256xf32>
      %c0_232 = arith.constant 0 : index
      %c95 = arith.constant 95 : index
      %255 = vector.load %arg8[%c0_232, %c95] : memref<2x435xf32, #tpu.memory_space<vmem>>, vector<2x256xf32>
      %256 = vector.broadcast %29 : f32 to vector<2x256xf32>
      %257 = arith.mulf %255, %256 : vector<2x256xf32>
      %258 = arith.addf %254, %257 : vector<2x256xf32>
      %c0_233 = arith.constant 0 : index
      %c95_234 = arith.constant 95 : index
      %259 = vector.load %arg9[%c0_233, %c95_234] : memref<2x435xf32, #tpu.memory_space<vmem>>, vector<2x256xf32>
      %260 = vector.broadcast %78 : f32 to vector<2x256xf32>
      %261 = arith.mulf %259, %260 : vector<2x256xf32>
      %262 = arith.addf %258, %261 : vector<2x256xf32>
      %c0_235 = arith.constant 0 : index
      %c111 = arith.constant 111 : index
      %263 = vector.load %arg8[%c0_235, %c111] : memref<2x435xf32, #tpu.memory_space<vmem>>, vector<2x256xf32>
      %264 = vector.broadcast %36 : f32 to vector<2x256xf32>
      %265 = arith.mulf %263, %264 : vector<2x256xf32>
      %266 = arith.addf %262, %265 : vector<2x256xf32>
      %c0_236 = arith.constant 0 : index
      %c111_237 = arith.constant 111 : index
      %267 = vector.load %arg9[%c0_236, %c111_237] : memref<2x435xf32, #tpu.memory_space<vmem>>, vector<2x256xf32>
      %268 = vector.broadcast %85 : f32 to vector<2x256xf32>
      %269 = arith.mulf %267, %268 : vector<2x256xf32>
      %270 = arith.addf %266, %269 : vector<2x256xf32>
      %c0_238 = arith.constant 0 : index
      %c127 = arith.constant 127 : index
      %271 = vector.load %arg8[%c0_238, %c127] : memref<2x435xf32, #tpu.memory_space<vmem>>, vector<2x256xf32>
      %272 = vector.broadcast %43 : f32 to vector<2x256xf32>
      %273 = arith.mulf %271, %272 : vector<2x256xf32>
      %274 = arith.addf %270, %273 : vector<2x256xf32>
      %c0_239 = arith.constant 0 : index
      %c127_240 = arith.constant 127 : index
      %275 = vector.load %arg9[%c0_239, %c127_240] : memref<2x435xf32, #tpu.memory_space<vmem>>, vector<2x256xf32>
      %276 = vector.broadcast %92 : f32 to vector<2x256xf32>
      %277 = arith.mulf %275, %276 : vector<2x256xf32>
      %278 = arith.addf %274, %277 : vector<2x256xf32>
      %c0_241 = arith.constant 0 : index
      %c143 = arith.constant 143 : index
      %279 = vector.load %arg8[%c0_241, %c143] : memref<2x435xf32, #tpu.memory_space<vmem>>, vector<2x256xf32>
      %280 = vector.broadcast %50 : f32 to vector<2x256xf32>
      %281 = arith.mulf %279, %280 : vector<2x256xf32>
      %282 = arith.addf %278, %281 : vector<2x256xf32>
      %c0_242 = arith.constant 0 : index
      %c143_243 = arith.constant 143 : index
      %283 = vector.load %arg9[%c0_242, %c143_243] : memref<2x435xf32, #tpu.memory_space<vmem>>, vector<2x256xf32>
      %284 = vector.broadcast %99 : f32 to vector<2x256xf32>
      %285 = arith.mulf %283, %284 : vector<2x256xf32>
      %286 = arith.addf %282, %285 : vector<2x256xf32>
      %c0_244 = arith.constant 0 : index
      %c159 = arith.constant 159 : index
      %287 = vector.load %arg8[%c0_244, %c159] : memref<2x435xf32, #tpu.memory_space<vmem>>, vector<2x256xf32>
      %288 = vector.broadcast %57 : f32 to vector<2x256xf32>
      %289 = arith.mulf %287, %288 : vector<2x256xf32>
      %290 = arith.addf %286, %289 : vector<2x256xf32>
      %c0_245 = arith.constant 0 : index
      %c159_246 = arith.constant 159 : index
      %291 = vector.load %arg9[%c0_245, %c159_246] : memref<2x435xf32, #tpu.memory_space<vmem>>, vector<2x256xf32>
      %292 = vector.broadcast %106 : f32 to vector<2x256xf32>
      %293 = arith.mulf %291, %292 : vector<2x256xf32>
      %294 = arith.addf %290, %293 : vector<2x256xf32>
      %c0_247 = arith.constant 0 : index
      %c175 = arith.constant 175 : index
      %295 = vector.load %arg8[%c0_247, %c175] : memref<2x435xf32, #tpu.memory_space<vmem>>, vector<2x256xf32>
      %296 = vector.broadcast %64 : f32 to vector<2x256xf32>
      %297 = arith.mulf %295, %296 : vector<2x256xf32>
      %298 = arith.addf %294, %297 : vector<2x256xf32>
      %c0_248 = arith.constant 0 : index
      %c175_249 = arith.constant 175 : index
      %299 = vector.load %arg9[%c0_248, %c175_249] : memref<2x435xf32, #tpu.memory_space<vmem>>, vector<2x256xf32>
      %300 = vector.broadcast %113 : f32 to vector<2x256xf32>
      %301 = arith.mulf %299, %300 : vector<2x256xf32>
      %302 = arith.addf %298, %301 : vector<2x256xf32>
      %c0_250 = arith.constant 0 : index
      %c0_251 = arith.constant 0 : index
      %303 = vector.load %arg6[%c0_250, %c0_251] : memref<2x256xf32, #tpu.memory_space<vmem>>, vector<2x256xf32>
      %c2_252 = arith.constant 2 : index
      %c0_253 = arith.constant 0 : index
      %304 = vector.load %arg4[%c2_252, %c0_253] : memref<7x256xf32, #tpu.memory_space<vmem>>, vector<1x256xf32>
      %305 = vector.broadcast %304 : vector<1x256xf32> to vector<2x256xf32>
      %306 = arith.mulf %302, %305 : vector<2x256xf32>
      %307 = arith.addf %303, %306 : vector<2x256xf32>
      %c0_254 = arith.constant 0 : index
      %c0_255 = arith.constant 0 : index
      %308 = vector.load %arg6[%c0_254, %c0_255] : memref<2x256xf32, #tpu.memory_space<vmem>>, vector<2x256xf32>
      tpu.vector_store %arg6[%c0_254, %c0_255], %307 {strides = array<i32>} : memref<2x256xf32, #tpu.memory_space<vmem>>, vector<2x256xf32>,
      %cst_256 = arith.constant 0.000000e+00 : f32
      %309 = vector.broadcast %cst_256 : f32 to vector<2x256xf32>
      %c0_257 = arith.constant 0 : index
      %c80 = arith.constant 80 : index
      %310 = vector.load %arg8[%c0_257, %c80] : memref<2x435xf32, #tpu.memory_space<vmem>>, vector<2x256xf32>
      %311 = vector.broadcast %23 : f32 to vector<2x256xf32>
      %312 = arith.mulf %310, %311 : vector<2x256xf32>
      %313 = arith.addf %309, %312 : vector<2x256xf32>
      %c0_258 = arith.constant 0 : index
      %c80_259 = arith.constant 80 : index
      %314 = vector.load %arg9[%c0_258, %c80_259] : memref<2x435xf32, #tpu.memory_space<vmem>>, vector<2x256xf32>
      %315 = vector.broadcast %72 : f32 to vector<2x256xf32>
      %316 = arith.mulf %314, %315 : vector<2x256xf32>
      %317 = arith.addf %313, %316 : vector<2x256xf32>
      %c0_260 = arith.constant 0 : index
      %c96 = arith.constant 96 : index
      %318 = vector.load %arg8[%c0_260, %c96] : memref<2x435xf32, #tpu.memory_space<vmem>>, vector<2x256xf32>
      %319 = vector.broadcast %30 : f32 to vector<2x256xf32>
      %320 = arith.mulf %318, %319 : vector<2x256xf32>
      %321 = arith.addf %317, %320 : vector<2x256xf32>
      %c0_261 = arith.constant 0 : index
      %c96_262 = arith.constant 96 : index
      %322 = vector.load %arg9[%c0_261, %c96_262] : memref<2x435xf32, #tpu.memory_space<vmem>>, vector<2x256xf32>
      %323 = vector.broadcast %79 : f32 to vector<2x256xf32>
      %324 = arith.mulf %322, %323 : vector<2x256xf32>
      %325 = arith.addf %321, %324 : vector<2x256xf32>
      %c0_263 = arith.constant 0 : index
      %c112 = arith.constant 112 : index
      %326 = vector.load %arg8[%c0_263, %c112] : memref<2x435xf32, #tpu.memory_space<vmem>>, vector<2x256xf32>
      %327 = vector.broadcast %37 : f32 to vector<2x256xf32>
      %328 = arith.mulf %326, %327 : vector<2x256xf32>
      %329 = arith.addf %325, %328 : vector<2x256xf32>
      %c0_264 = arith.constant 0 : index
      %c112_265 = arith.constant 112 : index
      %330 = vector.load %arg9[%c0_264, %c112_265] : memref<2x435xf32, #tpu.memory_space<vmem>>, vector<2x256xf32>
      %331 = vector.broadcast %86 : f32 to vector<2x256xf32>
      %332 = arith.mulf %330, %331 : vector<2x256xf32>
      %333 = arith.addf %329, %332 : vector<2x256xf32>
      %c0_266 = arith.constant 0 : index
      %c128_267 = arith.constant 128 : index
      %334 = vector.load %arg8[%c0_266, %c128_267] : memref<2x435xf32, #tpu.memory_space<vmem>>, vector<2x256xf32>
      %335 = vector.broadcast %44 : f32 to vector<2x256xf32>
      %336 = arith.mulf %334, %335 : vector<2x256xf32>
      %337 = arith.addf %333, %336 : vector<2x256xf32>
      %c0_268 = arith.constant 0 : index
      %c128_269 = arith.constant 128 : index
      %338 = vector.load %arg9[%c0_268, %c128_269] : memref<2x435xf32, #tpu.memory_space<vmem>>, vector<2x256xf32>
      %339 = vector.broadcast %93 : f32 to vector<2x256xf32>
      %340 = arith.mulf %338, %339 : vector<2x256xf32>
      %341 = arith.addf %337, %340 : vector<2x256xf32>
      %c0_270 = arith.constant 0 : index
      %c144 = arith.constant 144 : index
      %342 = vector.load %arg8[%c0_270, %c144] : memref<2x435xf32, #tpu.memory_space<vmem>>, vector<2x256xf32>
      %343 = vector.broadcast %51 : f32 to vector<2x256xf32>
      %344 = arith.mulf %342, %343 : vector<2x256xf32>
      %345 = arith.addf %341, %344 : vector<2x256xf32>
      %c0_271 = arith.constant 0 : index
      %c144_272 = arith.constant 144 : index
      %346 = vector.load %arg9[%c0_271, %c144_272] : memref<2x435xf32, #tpu.memory_space<vmem>>, vector<2x256xf32>
      %347 = vector.broadcast %100 : f32 to vector<2x256xf32>
      %348 = arith.mulf %346, %347 : vector<2x256xf32>
      %349 = arith.addf %345, %348 : vector<2x256xf32>
      %c0_273 = arith.constant 0 : index
      %c160 = arith.constant 160 : index
      %350 = vector.load %arg8[%c0_273, %c160] : memref<2x435xf32, #tpu.memory_space<vmem>>, vector<2x256xf32>
      %351 = vector.broadcast %58 : f32 to vector<2x256xf32>
      %352 = arith.mulf %350, %351 : vector<2x256xf32>
      %353 = arith.addf %349, %352 : vector<2x256xf32>
      %c0_274 = arith.constant 0 : index
      %c160_275 = arith.constant 160 : index
      %354 = vector.load %arg9[%c0_274, %c160_275] : memref<2x435xf32, #tpu.memory_space<vmem>>, vector<2x256xf32>
      %355 = vector.broadcast %107 : f32 to vector<2x256xf32>
      %356 = arith.mulf %354, %355 : vector<2x256xf32>
      %357 = arith.addf %353, %356 : vector<2x256xf32>
      %c0_276 = arith.constant 0 : index
      %c176 = arith.constant 176 : index
      %358 = vector.load %arg8[%c0_276, %c176] : memref<2x435xf32, #tpu.memory_space<vmem>>, vector<2x256xf32>
      %359 = vector.broadcast %65 : f32 to vector<2x256xf32>
      %360 = arith.mulf %358, %359 : vector<2x256xf32>
      %361 = arith.addf %357, %360 : vector<2x256xf32>
      %c0_277 = arith.constant 0 : index
      %c176_278 = arith.constant 176 : index
      %362 = vector.load %arg9[%c0_277, %c176_278] : memref<2x435xf32, #tpu.memory_space<vmem>>, vector<2x256xf32>
      %363 = vector.broadcast %114 : f32 to vector<2x256xf32>
      %364 = arith.mulf %362, %363 : vector<2x256xf32>
      %365 = arith.addf %361, %364 : vector<2x256xf32>
      %c0_279 = arith.constant 0 : index
      %c0_280 = arith.constant 0 : index
      %366 = vector.load %arg6[%c0_279, %c0_280] : memref<2x256xf32, #tpu.memory_space<vmem>>, vector<2x256xf32>
      %c3_281 = arith.constant 3 : index
      %c0_282 = arith.constant 0 : index
      %367 = vector.load %arg4[%c3_281, %c0_282] : memref<7x256xf32, #tpu.memory_space<vmem>>, vector<1x256xf32>
      %368 = vector.broadcast %367 : vector<1x256xf32> to vector<2x256xf32>
      %369 = arith.mulf %365, %368 : vector<2x256xf32>
      %370 = arith.addf %366, %369 : vector<2x256xf32>
      %c0_283 = arith.constant 0 : index
      %c0_284 = arith.constant 0 : index
      %371 = vector.load %arg6[%c0_283, %c0_284] : memref<2x256xf32, #tpu.memory_space<vmem>>, vector<2x256xf32>
      tpu.vector_store %arg6[%c0_283, %c0_284], %370 {strides = array<i32>} : memref<2x256xf32, #tpu.memory_space<vmem>>, vector<2x256xf32>,
      %cst_285 = arith.constant 0.000000e+00 : f32
      %372 = vector.broadcast %cst_285 : f32 to vector<2x256xf32>
      %c0_286 = arith.constant 0 : index
      %c81 = arith.constant 81 : index
      %373 = vector.load %arg8[%c0_286, %c81] : memref<2x435xf32, #tpu.memory_space<vmem>>, vector<2x256xf32>
      %374 = vector.broadcast %24 : f32 to vector<2x256xf32>
      %375 = arith.mulf %373, %374 : vector<2x256xf32>
      %376 = arith.addf %372, %375 : vector<2x256xf32>
      %c0_287 = arith.constant 0 : index
      %c81_288 = arith.constant 81 : index
      %377 = vector.load %arg9[%c0_287, %c81_288] : memref<2x435xf32, #tpu.memory_space<vmem>>, vector<2x256xf32>
      %378 = vector.broadcast %73 : f32 to vector<2x256xf32>
      %379 = arith.mulf %377, %378 : vector<2x256xf32>
      %380 = arith.addf %376, %379 : vector<2x256xf32>
      %c0_289 = arith.constant 0 : index
      %c97 = arith.constant 97 : index
      %381 = vector.load %arg8[%c0_289, %c97] : memref<2x435xf32, #tpu.memory_space<vmem>>, vector<2x256xf32>
      %382 = vector.broadcast %31 : f32 to vector<2x256xf32>
      %383 = arith.mulf %381, %382 : vector<2x256xf32>
      %384 = arith.addf %380, %383 : vector<2x256xf32>
      %c0_290 = arith.constant 0 : index
      %c97_291 = arith.constant 97 : index
      %385 = vector.load %arg9[%c0_290, %c97_291] : memref<2x435xf32, #tpu.memory_space<vmem>>, vector<2x256xf32>
      %386 = vector.broadcast %80 : f32 to vector<2x256xf32>
      %387 = arith.mulf %385, %386 : vector<2x256xf32>
      %388 = arith.addf %384, %387 : vector<2x256xf32>
      %c0_292 = arith.constant 0 : index
      %c113 = arith.constant 113 : index
      %389 = vector.load %arg8[%c0_292, %c113] : memref<2x435xf32, #tpu.memory_space<vmem>>, vector<2x256xf32>
      %390 = vector.broadcast %38 : f32 to vector<2x256xf32>
      %391 = arith.mulf %389, %390 : vector<2x256xf32>
      %392 = arith.addf %388, %391 : vector<2x256xf32>
      %c0_293 = arith.constant 0 : index
      %c113_294 = arith.constant 113 : index
      %393 = vector.load %arg9[%c0_293, %c113_294] : memref<2x435xf32, #tpu.memory_space<vmem>>, vector<2x256xf32>
      %394 = vector.broadcast %87 : f32 to vector<2x256xf32>
      %395 = arith.mulf %393, %394 : vector<2x256xf32>
      %396 = arith.addf %392, %395 : vector<2x256xf32>
      %c0_295 = arith.constant 0 : index
      %c129 = arith.constant 129 : index
      %397 = vector.load %arg8[%c0_295, %c129] : memref<2x435xf32, #tpu.memory_space<vmem>>, vector<2x256xf32>
      %398 = vector.broadcast %45 : f32 to vector<2x256xf32>
      %399 = arith.mulf %397, %398 : vector<2x256xf32>
      %400 = arith.addf %396, %399 : vector<2x256xf32>
      %c0_296 = arith.constant 0 : index
      %c129_297 = arith.constant 129 : index
      %401 = vector.load %arg9[%c0_296, %c129_297] : memref<2x435xf32, #tpu.memory_space<vmem>>, vector<2x256xf32>
      %402 = vector.broadcast %94 : f32 to vector<2x256xf32>
      %403 = arith.mulf %401, %402 : vector<2x256xf32>
      %404 = arith.addf %400, %403 : vector<2x256xf32>
      %c0_298 = arith.constant 0 : index
      %c145 = arith.constant 145 : index
      %405 = vector.load %arg8[%c0_298, %c145] : memref<2x435xf32, #tpu.memory_space<vmem>>, vector<2x256xf32>
      %406 = vector.broadcast %52 : f32 to vector<2x256xf32>
      %407 = arith.mulf %405, %406 : vector<2x256xf32>
      %408 = arith.addf %404, %407 : vector<2x256xf32>
      %c0_299 = arith.constant 0 : index
      %c145_300 = arith.constant 145 : index
      %409 = vector.load %arg9[%c0_299, %c145_300] : memref<2x435xf32, #tpu.memory_space<vmem>>, vector<2x256xf32>
      %410 = vector.broadcast %101 : f32 to vector<2x256xf32>
      %411 = arith.mulf %409, %410 : vector<2x256xf32>
      %412 = arith.addf %408, %411 : vector<2x256xf32>
      %c0_301 = arith.constant 0 : index
      %c161 = arith.constant 161 : index
      %413 = vector.load %arg8[%c0_301, %c161] : memref<2x435xf32, #tpu.memory_space<vmem>>, vector<2x256xf32>
      %414 = vector.broadcast %59 : f32 to vector<2x256xf32>
      %415 = arith.mulf %413, %414 : vector<2x256xf32>
      %416 = arith.addf %412, %415 : vector<2x256xf32>
      %c0_302 = arith.constant 0 : index
      %c161_303 = arith.constant 161 : index
      %417 = vector.load %arg9[%c0_302, %c161_303] : memref<2x435xf32, #tpu.memory_space<vmem>>, vector<2x256xf32>
      %418 = vector.broadcast %108 : f32 to vector<2x256xf32>
      %419 = arith.mulf %417, %418 : vector<2x256xf32>
      %420 = arith.addf %416, %419 : vector<2x256xf32>
      %c0_304 = arith.constant 0 : index
      %c177 = arith.constant 177 : index
      %421 = vector.load %arg8[%c0_304, %c177] : memref<2x435xf32, #tpu.memory_space<vmem>>, vector<2x256xf32>
      %422 = vector.broadcast %66 : f32 to vector<2x256xf32>
      %423 = arith.mulf %421, %422 : vector<2x256xf32>
      %424 = arith.addf %420, %423 : vector<2x256xf32>
      %c0_305 = arith.constant 0 : index
      %c177_306 = arith.constant 177 : index
      %425 = vector.load %arg9[%c0_305, %c177_306] : memref<2x435xf32, #tpu.memory_space<vmem>>, vector<2x256xf32>
      %426 = vector.broadcast %115 : f32 to vector<2x256xf32>
      %427 = arith.mulf %425, %426 : vector<2x256xf32>
      %428 = arith.addf %424, %427 : vector<2x256xf32>
      %c0_307 = arith.constant 0 : index
      %c0_308 = arith.constant 0 : index
      %429 = vector.load %arg6[%c0_307, %c0_308] : memref<2x256xf32, #tpu.memory_space<vmem>>, vector<2x256xf32>
      %c4_309 = arith.constant 4 : index
      %c0_310 = arith.constant 0 : index
      %430 = vector.load %arg4[%c4_309, %c0_310] : memref<7x256xf32, #tpu.memory_space<vmem>>, vector<1x256xf32>
      %431 = vector.broadcast %430 : vector<1x256xf32> to vector<2x256xf32>
      %432 = arith.mulf %428, %431 : vector<2x256xf32>
      %433 = arith.addf %429, %432 : vector<2x256xf32>
      %c0_311 = arith.constant 0 : index
      %c0_312 = arith.constant 0 : index
      %434 = vector.load %arg6[%c0_311, %c0_312] : memref<2x256xf32, #tpu.memory_space<vmem>>, vector<2x256xf32>
      tpu.vector_store %arg6[%c0_311, %c0_312], %433 {strides = array<i32>} : memref<2x256xf32, #tpu.memory_space<vmem>>, vector<2x256xf32>,
      %cst_313 = arith.constant 0.000000e+00 : f32
      %435 = vector.broadcast %cst_313 : f32 to vector<2x256xf32>
      %c0_314 = arith.constant 0 : index
      %c82 = arith.constant 82 : index
      %436 = vector.load %arg8[%c0_314, %c82] : memref<2x435xf32, #tpu.memory_space<vmem>>, vector<2x256xf32>
      %437 = vector.broadcast %25 : f32 to vector<2x256xf32>
      %438 = arith.mulf %436, %437 : vector<2x256xf32>
      %439 = arith.addf %435, %438 : vector<2x256xf32>
      %c0_315 = arith.constant 0 : index
      %c82_316 = arith.constant 82 : index
      %440 = vector.load %arg9[%c0_315, %c82_316] : memref<2x435xf32, #tpu.memory_space<vmem>>, vector<2x256xf32>
      %441 = vector.broadcast %74 : f32 to vector<2x256xf32>
      %442 = arith.mulf %440, %441 : vector<2x256xf32>
      %443 = arith.addf %439, %442 : vector<2x256xf32>
      %c0_317 = arith.constant 0 : index
      %c98 = arith.constant 98 : index
      %444 = vector.load %arg8[%c0_317, %c98] : memref<2x435xf32, #tpu.memory_space<vmem>>, vector<2x256xf32>
      %445 = vector.broadcast %32 : f32 to vector<2x256xf32>
      %446 = arith.mulf %444, %445 : vector<2x256xf32>
      %447 = arith.addf %443, %446 : vector<2x256xf32>
      %c0_318 = arith.constant 0 : index
      %c98_319 = arith.constant 98 : index
      %448 = vector.load %arg9[%c0_318, %c98_319] : memref<2x435xf32, #tpu.memory_space<vmem>>, vector<2x256xf32>
      %449 = vector.broadcast %81 : f32 to vector<2x256xf32>
      %450 = arith.mulf %448, %449 : vector<2x256xf32>
      %451 = arith.addf %447, %450 : vector<2x256xf32>
      %c0_320 = arith.constant 0 : index
      %c114 = arith.constant 114 : index
      %452 = vector.load %arg8[%c0_320, %c114] : memref<2x435xf32, #tpu.memory_space<vmem>>, vector<2x256xf32>
      %453 = vector.broadcast %39 : f32 to vector<2x256xf32>
      %454 = arith.mulf %452, %453 : vector<2x256xf32>
      %455 = arith.addf %451, %454 : vector<2x256xf32>
      %c0_321 = arith.constant 0 : index
      %c114_322 = arith.constant 114 : index
      %456 = vector.load %arg9[%c0_321, %c114_322] : memref<2x435xf32, #tpu.memory_space<vmem>>, vector<2x256xf32>
      %457 = vector.broadcast %88 : f32 to vector<2x256xf32>
      %458 = arith.mulf %456, %457 : vector<2x256xf32>
      %459 = arith.addf %455, %458 : vector<2x256xf32>
      %c0_323 = arith.constant 0 : index
      %c130 = arith.constant 130 : index
      %460 = vector.load %arg8[%c0_323, %c130] : memref<2x435xf32, #tpu.memory_space<vmem>>, vector<2x256xf32>
      %461 = vector.broadcast %46 : f32 to vector<2x256xf32>
      %462 = arith.mulf %460, %461 : vector<2x256xf32>
      %463 = arith.addf %459, %462 : vector<2x256xf32>
      %c0_324 = arith.constant 0 : index
      %c130_325 = arith.constant 130 : index
      %464 = vector.load %arg9[%c0_324, %c130_325] : memref<2x435xf32, #tpu.memory_space<vmem>>, vector<2x256xf32>
      %465 = vector.broadcast %95 : f32 to vector<2x256xf32>
      %466 = arith.mulf %464, %465 : vector<2x256xf32>
      %467 = arith.addf %463, %466 : vector<2x256xf32>
      %c0_326 = arith.constant 0 : index
      %c146 = arith.constant 146 : index
      %468 = vector.load %arg8[%c0_326, %c146] : memref<2x435xf32, #tpu.memory_space<vmem>>, vector<2x256xf32>
      %469 = vector.broadcast %53 : f32 to vector<2x256xf32>
      %470 = arith.mulf %468, %469 : vector<2x256xf32>
      %471 = arith.addf %467, %470 : vector<2x256xf32>
      %c0_327 = arith.constant 0 : index
      %c146_328 = arith.constant 146 : index
      %472 = vector.load %arg9[%c0_327, %c146_328] : memref<2x435xf32, #tpu.memory_space<vmem>>, vector<2x256xf32>
      %473 = vector.broadcast %102 : f32 to vector<2x256xf32>
      %474 = arith.mulf %472, %473 : vector<2x256xf32>
      %475 = arith.addf %471, %474 : vector<2x256xf32>
      %c0_329 = arith.constant 0 : index
      %c162 = arith.constant 162 : index
      %476 = vector.load %arg8[%c0_329, %c162] : memref<2x435xf32, #tpu.memory_space<vmem>>, vector<2x256xf32>
      %477 = vector.broadcast %60 : f32 to vector<2x256xf32>
      %478 = arith.mulf %476, %477 : vector<2x256xf32>
      %479 = arith.addf %475, %478 : vector<2x256xf32>
      %c0_330 = arith.constant 0 : index
      %c162_331 = arith.constant 162 : index
      %480 = vector.load %arg9[%c0_330, %c162_331] : memref<2x435xf32, #tpu.memory_space<vmem>>, vector<2x256xf32>
      %481 = vector.broadcast %109 : f32 to vector<2x256xf32>
      %482 = arith.mulf %480, %481 : vector<2x256xf32>
      %483 = arith.addf %479, %482 : vector<2x256xf32>
      %c0_332 = arith.constant 0 : index
      %c178 = arith.constant 178 : index
      %484 = vector.load %arg8[%c0_332, %c178] : memref<2x435xf32, #tpu.memory_space<vmem>>, vector<2x256xf32>
      %485 = vector.broadcast %67 : f32 to vector<2x256xf32>
      %486 = arith.mulf %484, %485 : vector<2x256xf32>
      %487 = arith.addf %483, %486 : vector<2x256xf32>
      %c0_333 = arith.constant 0 : index
      %c178_334 = arith.constant 178 : index
      %488 = vector.load %arg9[%c0_333, %c178_334] : memref<2x435xf32, #tpu.memory_space<vmem>>, vector<2x256xf32>
      %489 = vector.broadcast %116 : f32 to vector<2x256xf32>
      %490 = arith.mulf %488, %489 : vector<2x256xf32>
      %491 = arith.addf %487, %490 : vector<2x256xf32>
      %c0_335 = arith.constant 0 : index
      %c0_336 = arith.constant 0 : index
      %492 = vector.load %arg6[%c0_335, %c0_336] : memref<2x256xf32, #tpu.memory_space<vmem>>, vector<2x256xf32>
      %c5_337 = arith.constant 5 : index
      %c0_338 = arith.constant 0 : index
      %493 = vector.load %arg4[%c5_337, %c0_338] : memref<7x256xf32, #tpu.memory_space<vmem>>, vector<1x256xf32>
      %494 = vector.broadcast %493 : vector<1x256xf32> to vector<2x256xf32>
      %495 = arith.mulf %491, %494 : vector<2x256xf32>
      %496 = arith.addf %492, %495 : vector<2x256xf32>
      %c0_339 = arith.constant 0 : index
      %c0_340 = arith.constant 0 : index
      %497 = vector.load %arg6[%c0_339, %c0_340] : memref<2x256xf32, #tpu.memory_space<vmem>>, vector<2x256xf32>
      tpu.vector_store %arg6[%c0_339, %c0_340], %496 {strides = array<i32>} : memref<2x256xf32, #tpu.memory_space<vmem>>, vector<2x256xf32>,
      %cst_341 = arith.constant 0.000000e+00 : f32
      %498 = vector.broadcast %cst_341 : f32 to vector<2x256xf32>
      %c0_342 = arith.constant 0 : index
      %c83 = arith.constant 83 : index
      %499 = vector.load %arg8[%c0_342, %c83] : memref<2x435xf32, #tpu.memory_space<vmem>>, vector<2x256xf32>
      %500 = vector.broadcast %26 : f32 to vector<2x256xf32>
      %501 = arith.mulf %499, %500 : vector<2x256xf32>
      %502 = arith.addf %498, %501 : vector<2x256xf32>
      %c0_343 = arith.constant 0 : index
      %c83_344 = arith.constant 83 : index
      %503 = vector.load %arg9[%c0_343, %c83_344] : memref<2x435xf32, #tpu.memory_space<vmem>>, vector<2x256xf32>
      %504 = vector.broadcast %75 : f32 to vector<2x256xf32>
      %505 = arith.mulf %503, %504 : vector<2x256xf32>
      %506 = arith.addf %502, %505 : vector<2x256xf32>
      %c0_345 = arith.constant 0 : index
      %c99 = arith.constant 99 : index
      %507 = vector.load %arg8[%c0_345, %c99] : memref<2x435xf32, #tpu.memory_space<vmem>>, vector<2x256xf32>
      %508 = vector.broadcast %33 : f32 to vector<2x256xf32>
      %509 = arith.mulf %507, %508 : vector<2x256xf32>
      %510 = arith.addf %506, %509 : vector<2x256xf32>
      %c0_346 = arith.constant 0 : index
      %c99_347 = arith.constant 99 : index
      %511 = vector.load %arg9[%c0_346, %c99_347] : memref<2x435xf32, #tpu.memory_space<vmem>>, vector<2x256xf32>
      %512 = vector.broadcast %82 : f32 to vector<2x256xf32>
      %513 = arith.mulf %511, %512 : vector<2x256xf32>
      %514 = arith.addf %510, %513 : vector<2x256xf32>
      %c0_348 = arith.constant 0 : index
      %c115 = arith.constant 115 : index
      %515 = vector.load %arg8[%c0_348, %c115] : memref<2x435xf32, #tpu.memory_space<vmem>>, vector<2x256xf32>
      %516 = vector.broadcast %40 : f32 to vector<2x256xf32>
      %517 = arith.mulf %515, %516 : vector<2x256xf32>
      %518 = arith.addf %514, %517 : vector<2x256xf32>
      %c0_349 = arith.constant 0 : index
      %c115_350 = arith.constant 115 : index
      %519 = vector.load %arg9[%c0_349, %c115_350] : memref<2x435xf32, #tpu.memory_space<vmem>>, vector<2x256xf32>
      %520 = vector.broadcast %89 : f32 to vector<2x256xf32>
      %521 = arith.mulf %519, %520 : vector<2x256xf32>
      %522 = arith.addf %518, %521 : vector<2x256xf32>
      %c0_351 = arith.constant 0 : index
      %c131 = arith.constant 131 : index
      %523 = vector.load %arg8[%c0_351, %c131] : memref<2x435xf32, #tpu.memory_space<vmem>>, vector<2x256xf32>
      %524 = vector.broadcast %47 : f32 to vector<2x256xf32>
      %525 = arith.mulf %523, %524 : vector<2x256xf32>
      %526 = arith.addf %522, %525 : vector<2x256xf32>
      %c0_352 = arith.constant 0 : index
      %c131_353 = arith.constant 131 : index
      %527 = vector.load %arg9[%c0_352, %c131_353] : memref<2x435xf32, #tpu.memory_space<vmem>>, vector<2x256xf32>
      %528 = vector.broadcast %96 : f32 to vector<2x256xf32>
      %529 = arith.mulf %527, %528 : vector<2x256xf32>
      %530 = arith.addf %526, %529 : vector<2x256xf32>
      %c0_354 = arith.constant 0 : index
      %c147 = arith.constant 147 : index
      %531 = vector.load %arg8[%c0_354, %c147] : memref<2x435xf32, #tpu.memory_space<vmem>>, vector<2x256xf32>
      %532 = vector.broadcast %54 : f32 to vector<2x256xf32>
      %533 = arith.mulf %531, %532 : vector<2x256xf32>
      %534 = arith.addf %530, %533 : vector<2x256xf32>
      %c0_355 = arith.constant 0 : index
      %c147_356 = arith.constant 147 : index
      %535 = vector.load %arg9[%c0_355, %c147_356] : memref<2x435xf32, #tpu.memory_space<vmem>>, vector<2x256xf32>
      %536 = vector.broadcast %103 : f32 to vector<2x256xf32>
      %537 = arith.mulf %535, %536 : vector<2x256xf32>
      %538 = arith.addf %534, %537 : vector<2x256xf32>
      %c0_357 = arith.constant 0 : index
      %c163 = arith.constant 163 : index
      %539 = vector.load %arg8[%c0_357, %c163] : memref<2x435xf32, #tpu.memory_space<vmem>>, vector<2x256xf32>
      %540 = vector.broadcast %61 : f32 to vector<2x256xf32>
      %541 = arith.mulf %539, %540 : vector<2x256xf32>
      %542 = arith.addf %538, %541 : vector<2x256xf32>
      %c0_358 = arith.constant 0 : index
      %c163_359 = arith.constant 163 : index
      %543 = vector.load %arg9[%c0_358, %c163_359] : memref<2x435xf32, #tpu.memory_space<vmem>>, vector<2x256xf32>
      %544 = vector.broadcast %110 : f32 to vector<2x256xf32>
      %545 = arith.mulf %543, %544 : vector<2x256xf32>
      %546 = arith.addf %542, %545 : vector<2x256xf32>
      %c0_360 = arith.constant 0 : index
      %c179 = arith.constant 179 : index
      %547 = vector.load %arg8[%c0_360, %c179] : memref<2x435xf32, #tpu.memory_space<vmem>>, vector<2x256xf32>
      %548 = vector.broadcast %68 : f32 to vector<2x256xf32>
      %549 = arith.mulf %547, %548 : vector<2x256xf32>
      %550 = arith.addf %546, %549 : vector<2x256xf32>
      %c0_361 = arith.constant 0 : index
      %c179_362 = arith.constant 179 : index
      %551 = vector.load %arg9[%c0_361, %c179_362] : memref<2x435xf32, #tpu.memory_space<vmem>>, vector<2x256xf32>
      %552 = vector.broadcast %117 : f32 to vector<2x256xf32>
      %553 = arith.mulf %551, %552 : vector<2x256xf32>
      %554 = arith.addf %550, %553 : vector<2x256xf32>
      %c0_363 = arith.constant 0 : index
      %c0_364 = arith.constant 0 : index
      %555 = vector.load %arg6[%c0_363, %c0_364] : memref<2x256xf32, #tpu.memory_space<vmem>>, vector<2x256xf32>
      %c6_365 = arith.constant 6 : index
      %c0_366 = arith.constant 0 : index
      %556 = vector.load %arg4[%c6_365, %c0_366] : memref<7x256xf32, #tpu.memory_space<vmem>>, vector<1x256xf32>
      %557 = vector.broadcast %556 : vector<1x256xf32> to vector<2x256xf32>
      %558 = arith.mulf %554, %557 : vector<2x256xf32>
      %559 = arith.addf %555, %558 : vector<2x256xf32>
      %c0_367 = arith.constant 0 : index
      %c0_368 = arith.constant 0 : index
      %560 = vector.load %arg6[%c0_367, %c0_368] : memref<2x256xf32, #tpu.memory_space<vmem>>, vector<2x256xf32>
      tpu.vector_store %arg6[%c0_367, %c0_368], %559 {strides = array<i32>} : memref<2x256xf32, #tpu.memory_space<vmem>>, vector<2x256xf32>,
      %c0_369 = arith.constant 0 : index
      %c0_370 = arith.constant 0 : index
      %561 = vector.load %arg6[%c0_369, %c0_370] : memref<2x256xf32, #tpu.memory_space<vmem>>, vector<2x256xf32>
      %562 = arith.negf %561 : vector<2x256xf32>
      %563 = math.exp %562 : vector<2x256xf32>
      %cst_371 = arith.constant 1.000000e+00 : f32
      %564 = vector.broadcast %cst_371 : f32 to vector<2x256xf32>
      %565 = arith.addf %564, %563 : vector<2x256xf32>
      %566 = arith.divf %564, %565 : vector<2x256xf32>
      %c0_372 = arith.constant 0 : index
      %c0_373 = arith.constant 0 : index
      %567 = vector.load %arg5[%c0_372, %c0_373] : memref<2x256xf32, #tpu.memory_space<vmem>>, vector<2x256xf32>
      tpu.vector_store %arg5[%c0_372, %c0_373], %566 {strides = array<i32>} : memref<2x256xf32, #tpu.memory_space<vmem>>, vector<2x256xf32>,
    } else {
    }
    return
  }
  func.func @transform_0(%arg0: i32, %arg1: i32) -> (i32, i32, i32) {
    %c0_i32 = arith.constant 0 : i32
    %c0_i32_0 = arith.constant 0 : i32
    return %arg0, %arg1, %c0_i32 : i32, i32, i32
  }
  func.func @transform_1(%arg0: i32, %arg1: i32) -> (i32, i32) {
    %c0_i32 = arith.constant 0 : i32
    %c0_i32_0 = arith.constant 0 : i32
    %c0_i32_1 = arith.constant 0 : i32
    return %c0_i32, %c0_i32_0 : i32, i32
  }
  func.func @transform_2(%arg0: i32, %arg1: i32) -> (i32, i32) {
    %c0_i32 = arith.constant 0 : i32
    %c0_i32_0 = arith.constant 0 : i32
    %c0_i32_1 = arith.constant 0 : i32
    return %c0_i32, %c0_i32_0 : i32, i32
  }
  func.func @transform_3(%arg0: i32, %arg1: i32) -> (i32, i32) {
    %c0_i32 = arith.constant 0 : i32
    %c0_i32_0 = arith.constant 0 : i32
    return %arg0, %c0_i32 : i32, i32
  }
}

</mosaic_0001>

<bundles_post_ra>
// kernel: tpu_custom_call.1
= control target key start
LH: loop header
LB: loop body
LE: loop exit
PB: predicated region body
PF: predicated region fallthrough
CT: control target
= control target key end

     0   :  { %8 = vsyncpa [#allocation7], 0  ;;  %s2306_s0 = inlined_call_operand.hbm [shape: f32[2,4,256], index: 0, kind: input, shape index: {}]   ;;  %s2307_s1 = inlined_call_operand.vmem [shape: f32[2,49], index: 1, kind: input, shape index: {}]   ;;  %s2308_s2 = inlined_call_operand.hbm [shape: f32[7,256], index: 2, kind: input, shape index: {}]   ;;  %s2309_s3 = inlined_call_operand.hbm [shape: f32[2,256], index: 3, kind: output, shape index: {}]  }
   0x1   :  { %9 = vsyncpa [#allocation9], 0 }
   0x2   :  { %10 = vsyncpa [#allocation12], 0 }
   0x3   :  { %11 = vsyncpa [#allocation8], 0  ;;  %s1698_s12 = smov [#allocation6]   ;;  %s30_s16 = sshll.u32 %s2307_s1, 4  ;;  %s31_s16 = int_to_ptr.vmem [resolvable:$true] %s30_s16 }
   0x4   :  { %s17_s13 = sshll.u32 %s1698_s12, 4  ;;  %s1612_s19 = scalar_lea.hbm %s2306_s0, 256  ;;  %s18_s13 = int_to_ptr.vmem [resolvable:$true] %s17_s13 }
   0x5   :  { %p1613_p0 = scmp.ne.s32.totalorder %s2306_s0, %s1612_s19  ;;  %p1616_p1 = scmp.lt.u32.totalorder %s1612_s19, %s2306_s0 }
   0x7   :  { %p1618_p2 = pnand %p1616_p1, %p1613_p0 }
   0x9   :  { %1621 = shalt.err (!%p1618_p2)
}
   0xa   :  { %s1622_s24 = scalar_lea.vmem %s18_s13, 256  ;;  %p1627_p4 = scmp.lt.s32.totalorder %s18_s13, %s18_s13 }
   0xb   :  { %p1623_p3 = scmp.ne.s32.totalorder %s18_s13, %s1622_s24  ;;  %p1628_p5 = scmp.lt.s32.totalorder %s1622_s24, %s1622_s24 }
   0xd   :  { %p1629_p6 = por %p1628_p5, %p1627_p4 }
   0xf   :  { %p1630_p7 = pnand %p1629_p6, %p1623_p3 }
  0x11   :  { %1633 = shalt.err (!%p1630_p7)
}
  0x12   :  { %s1699_s1 = smov 128   ;;  %s1700_s25 = smov 8  }
  0x13   :  { %23 = dma.hbm_to_vmem [thread:$0]  %s2306_s0, 256, %s18_s13, [#allocation7], %s1699_s1, %s1699_s1, %s1700_s25  }
  0x14   :  { %s1634_s28 = scalar_lea.vmem %s31_s16, 32  ;;  %p1639_p9 = scmp.lt.s32.totalorder %s31_s16, %s31_s16 }
  0x15   :  { %p1635_p8 = scmp.ne.s32.totalorder %s31_s16, %s1634_s28  ;;  %p1640_p10 = scmp.lt.s32.totalorder %s1634_s28, %s1634_s28 }
  0x17   :  { %p1641_p11 = por %p1640_p10, %p1639_p9 }
  0x19   :  { %p1642_p12 = pnand %p1641_p11, %p1635_p8 }
  0x1b   :  { %1645 = shalt.err (!%p1642_p12)
}
  0x1c   :  { %s1701_s29 = smov [#allocation10]   ;;  %s1702_s30 = smov [#allocation11]  }
  0x1d   :  { %33 = dma.vmem_to_smem %s31_s16, 32, %s1701_s29, [#allocation9]  }
  0x1e   :  { %s40_s4 = sshll.u32 %s1702_s30, 4  ;;  %s1646_s7 = scalar_lea.hbm %s2308_s2, 256  ;;  %s41_s4 = int_to_ptr.vmem [resolvable:$true] %s40_s4 }
  0x1f   :  { %p1647_p13 = scmp.ne.s32.totalorder %s2308_s2, %s1646_s7  ;;  %p1650_p0 = scmp.lt.u32.totalorder %s1646_s7, %s2308_s2 }
  0x21   :  { %p1652_p1 = pnand %p1650_p0, %p1647_p13 }
  0x23   :  { %1655 = shalt.err (!%p1652_p1)
}
  0x24   :  { %s1656_s11 = scalar_lea.vmem %s41_s4, 256  ;;  %p1661_p3 = scmp.lt.s32.totalorder %s41_s4, %s41_s4 }
  0x25   :  { %p1657_p2 = scmp.ne.s32.totalorder %s41_s4, %s1656_s11  ;;  %p1662_p4 = scmp.lt.s32.totalorder %s1656_s11, %s1656_s11 }
  0x27   :  { %p1663_p5 = por %p1662_p4, %p1661_p3 }
  0x29   :  { %p1664_p6 = pnand %p1663_p5, %p1657_p2 }
  0x2b   :  { %1667 = shalt.err (!%p1664_p6)
}
  0x2c   :  { %43 = dma.hbm_to_vmem [thread:$0]  %s2308_s2, 256, %s41_s4, [#allocation12]  }
  0x2d   :  { %1690 = dma.done.wait [#allocation7], 256  }
  0x2e   :  { %1691 = vsyncadd [#allocation7], 4294967040 }
  0x2f   :  { %1692 = dma.done.wait [#allocation9], 32  }
  0x30   :  { %1693 = vsyncadd [#allocation9], 4294967264 }
  0x31   :  { %1694 = dma.done.wait [#allocation12], 256  }
  0x32   :  { %1695 = vsyncadd [#allocation12], 4294967040 }
  0x33   :  { %53 = sfence }
  0x34   :  { %v131_v0 = vlaneseq  ;;  %v1703_v1 = vmov 1983009808   ;;  %v54_v3 = vld [vmem:[#allocation6] sm:$0xff]  ;;  %v55_v4 = vld [vmem:[#allocation6 + $0x8] sm:$0xff]  ;;  %vm62_vm0 = vcmask 1043456   ;;  %vm262_vm1 = vcmask 1041408  }
  0x35   :  { %v129_v2 = vunpack.c.l.s4 %v1703_v1  ;;  %v58_v6 = vcombine.high %v54_v3, %v54_v3  ;;  %v59_v7 = vcombine.high %v55_v4, %v55_v4  ;;  %v63_v8 = vsel %vm62_vm0, %v54_v3, 0.0  ;;  %v499_v10 = vld [vmem:[#allocation11] ss:$8 sm:$0x3]  ;;  %s1704_s2 = smov 77   ;;  %s1495_s14 = sld [smem:[#allocation10 + $0xe]] }
  0x36   :  { %v132_v5 = vshrl.u32 %v131_v0, 7  ;;  %v64_v11 = vrot.slane %v63_v8, 4  ;;  %v77_v12 = vsel %vm62_vm0, %v55_v4, 0.0  ;;  %vm263_vm2 = vcmask 1043458   ;;  %s1488_s15 = sld [smem:[#allocation10 + $0x7]]  ;;  %s1544_s16 = sld [smem:[#allocation10 + $0x8e]] }
  0x37   :  { %v130_v9 = vunpack.c.0.s8 %v129_v2  ;;  %v70_v15 = vsel %vm62_vm0, %v58_v6, 0.0  ;;  %v78_v16 = vrot.slane %v77_v12, 4  ;;  %v84_v19 = vsel %vm62_vm0, %v59_v7, 0.0  ;;  %vm264_vm3 = vmor %vm263_vm2, %vm262_vm1  ;;  %s1537_s17 = sld [smem:[#allocation10 + $0x87]]  ;;  %s1551_s18 = sld [smem:[#allocation10 + $0x95]] }
  0x38   :  { %v1773_v13 = vsub.s32 0, %v132_v5  ;;  %v1775_v14 = vsub.s32 1, %v132_v5  ;;  %v65_v17 = vadd.f32 %v64_v11, %v63_v8  ;;  %v71_v18 = vrot.slane %v70_v15, 4  ;;  %s1502_s19 = sld [smem:[#allocation10 + $0x15]]  ;;  %s1706_s20 = smov 96  }
  0x39   :  { %v79_v22 = vadd.f32 %v78_v16, %v77_v12  ;;  %v85_v23 = vrot.slane %v84_v19, 4  ;;  %v1781_v24 = vsub.s32 %v130_v9, %v132_v5  ;;  %vm265_vm4 = vcmask 1045508   ;;  %s1707_s21 = smov 112   ;;  %s275_s22 = sld [smem:[#allocation10]] }
  0x3a   :  { %v504_v20 = vrot.slane %v499_v10, %v1773_v13  ;;  %v508_v21 = vrot.slane %v499_v10, %v1775_v14  ;;  %v66_v25 = vrot.slane %v65_v17, 2  ;;  %v72_v26 = vadd.f32 %v71_v18, %v70_v15  ;;  %vm266_vm6 = vmor %vm265_vm4, %vm264_vm3  ;;  %s1802_s23 = sld [smem:[#allocation10 + $0x1c]]  ;;  %s1804_s24 = sld [smem:[#allocation10 + $0x8]] }
  0x3b   :  { %v80_v28 = vrot.slane %v79_v22, 2  ;;  %v86_v29 = vadd.f32 %v85_v23, %v84_v19  ;;  %vm267_vm5 = vcmask 416774   ;;  %v1705_v39 = vmov 0.0   ;;  %s1806_s1 = sld [smem:[#allocation10 + $0x80]]  ;;  %s1808_s25 = sld [smem:[#allocation10 + $0x1]] }
  0x3c   :  { %v509_v27 = vcombine.low %v504_v20, %v508_v21  ;;  %v67_v30 = vadd.f32 %v66_v25, %v65_v17  ;;  %v73_v31 = vrot.slane %v72_v26, 2  ;;  %vm268_vm7 = vmor %vm267_vm5, %vm266_vm6  ;;  %v91_v40 = vsel %vm62_vm0, %v54_v3, -inf  ;;  %s1810_s26 = sld [smem:[#allocation10 + $0x81]]  ;;  %s1812_s27 = sld [smem:[#allocation10 + $0x9c]] }
  0x3d   :  { %v81_v33 = vadd.f32 %v80_v28, %v79_v22  ;;  %v87_v34 = vrot.slane %v86_v29, 2  ;;  %269 = vst.msk [vmem:[#allocation4] sm:$0xff] %vm268_vm7, %v1705_v39  ;;  %270 = vst.msk [vmem:[#allocation5] sm:$0xff] %vm268_vm7, %v1705_v39  ;;  %v98_v41 = vsel %vm62_vm0, %v58_v6, -inf  ;;  %v92_v44 = vrot.slane %v91_v40, 4  ;;  %s1814_s28 = sld [smem:[#allocation10 + $0x88]] }
  0x3e   :  { %v516_v32 = vrot.slane %v509_v27, %v1781_v24  ;;  %v68_v35 = vrot.slane %v67_v30, 1  ;;  %v74_v36 = vadd.f32 %v73_v31, %v72_v26  ;;  %v99_v45 = vrot.slane %v98_v41, 4  ;;  %s1818_s29 = sld [smem:[#allocation10 + $0x23]]  ;;  %s1822_s30 = sld [smem:[#allocation10 + $0xf]] }
  0x3f   :  { %v82_v37 = vrot.slane %v81_v33, 1  ;;  %v88_v38 = vadd.f32 %v87_v34, %v86_v29  ;;  %v105_v48 = vsel %vm62_vm0, %v55_v4, -inf  ;;  %v112_v49 = vsel %vm62_vm0, %v59_v7, -inf  ;;  %s1708_s4 = smov 80   ;;  %s1829_s5 = sld [smem:[#allocation10 + $0xa3]] }
  0x40   :  { %517 = vrot.lane.b32.xlu1 %v516_v32, %s1704_s2  ;;  %v69_v42 = vadd.f32 %v68_v35, %v67_v30  ;;  %v75_v43 = vrot.slane %v74_v36, 1  ;;  %v93_v51 = vmax.f32 %v91_v40, %v92_v44  ;;  %v100_v52 = vmax.f32 %v98_v41, %v99_v45  ;;  %s1545_s6 = sld [smem:[#allocation10 + $0x8f]]  ;;  %s1709_s7 = smov 64  }
  0x41   :  { %v83_v46 = vadd.f32 %v82_v37, %v81_v33  ;;  %v89_v47 = vrot.slane %v88_v38, 1  ;;  %v106_v53 = vrot.slane %v105_v48, 4  ;;  %v113_v55 = vrot.slane %v112_v49, 4  ;;  %s1523_s8 = sld [smem:[#allocation10 + $0x2a]]  ;;  %s1503_s9 = sld [smem:[#allocation10 + $0x16]] }
  0x42   :  { %v76_v50 = vadd.f32 %v75_v43, %v74_v36  ;;  %v94_v57 = vrot.slane %v93_v51, 2  ;;  %v101_v58 = vrot.slane %v100_v52, 2  ;;  %vm148_vm8 = vcmask 1041409   ;;  %s1483_s0 = sld [smem:[#allocation10 + $0x2]]  ;;  %s1490_s11 = sld [smem:[#allocation10 + $0x9]] }
  0x43   :  { %v90_v54 = vadd.f32 %v89_v47, %v88_v38  ;;  %v107_v59 = vmax.f32 %v105_v48, %v106_v53  ;;  %v114_v61 = vmax.f32 %v112_v49, %v113_v55  ;;  %vm150_vm9 = vcmask 1043459   ;;  %s1532_s10 = sld [smem:[#allocation10 + $0x82]]  ;;  %s1552_s12 = sld [smem:[#allocation10 + $0x96]] }
  0x44   :  { %v127_v56 = vcombine.low %v69_v42, %v76_v50  ;;  %v95_v62 = vmax.f32 %v93_v51, %v94_v57  ;;  %v102_v63 = vmax.f32 %v100_v52, %v101_v58  ;;  %vm152_vm10 = vcmask 1045509   ;;  %s1710_s13 = smov 48   ;;  %s1850_s2 = sld [smem:[#allocation10 + $0x1d]] }
  0x45   :  { %v135_v60 = vcombine.low %v83_v46, %v90_v54  ;;  %v108_v0 = vrot.slane %v107_v59, 2  ;;  %v115_v3 = vrot.slane %v114_v61, 2  ;;  %vm154_vm11 = vcmask 1047559  }
  0x46   :  { %v134_v1 = vrot.slane %v127_v56, %v1781_v24  ;;  %v96_v4 = vrot.slane %v95_v62, 1  ;;  %v103_v5 = vrot.slane %v102_v63, 1  ;;  %v401_v32 = vstv %s1495_s14  ;;  %s1572_s14 = sld [smem:[#allocation10 + $0xaa]] }
  0x47   :  { %v142_v2 = vrot.slane %v135_v60, %v1781_v24  ;;  %v109_v6 = vmax.f32 %v107_v59, %v108_v0  ;;  %v116_v8 = vmax.f32 %v114_v61, %v115_v3  ;;  %v382_v33 = vstv %s1488_s15  ;;  %s1497_s15 = sld [smem:[#allocation10 + $0x10]] }
  0x48   :  { %v97_v9 = vmax.f32 %v95_v62, %v96_v4  ;;  %v104_v10 = vmax.f32 %v102_v63, %v103_v5  ;;  %v411_v38 = vstv %s1544_s16  ;;  %v430_v41 = vstv %s1551_s18  ;;  %s1539_s16 = sld [smem:[#allocation10 + $0x89]]  ;;  %s1546_s18 = sld [smem:[#allocation10 + $0x90]] }
  0x49   :  { %v147_v7 = vrot.slane %v142_v2, 7  ;;  %v110_v11 = vrot.slane %v109_v6, 1  ;;  %v117_v15 = vrot.slane %v116_v8, 1  ;;  %v420_v42 = vstv %s1502_s19  ;;  %s1559_s19 = sld [smem:[#allocation10 + $0x9d]] }
  0x4a   :  { %v162_v20 = vcombine.low %v97_v9, %v104_v10  ;;  %v375_v47 = vstv %s275_s22  ;;  %v440_v49 = vstv %s1802_s23  ;;  %v541_v51 = vstv %s1804_s24  ;;  %s1504_s22 = sld [smem:[#allocation10 + $0x17]]  ;;  %s1517_s23 = sld [smem:[#allocation10 + $0x24]] }
  0x4b   :  { %v149_v12 = vsel %vm148_vm8, %v147_v7, %v134_v1  ;;  %v111_v17 = vmax.f32 %v109_v6, %v110_v11  ;;  %v118_v19 = vmax.f32 %v116_v8, %v117_v15  ;;  %v379_v52 = vstv %s1806_s1  ;;  %s1553_s24 = sld [smem:[#allocation10 + $0x97]]  ;;  %s1566_s1 = sld [smem:[#allocation10 + $0xa4]] }
  0x4c   :  { %v151_v16 = vsel %vm150_vm9, %v147_v7, %v149_v12  ;;  %v169_v23 = vrot.slane %v162_v20, %v1781_v24  ;;  %v534_v54 = vstv %s1808_s25  ;;  %v538_v55 = vstv %s1810_s26  ;;  %s1484_s25 = sld [smem:[#allocation10 + $0x3]] }
  0x4d   :  { %v153_v18 = vsel %vm152_vm10, %v147_v7, %v151_v16  ;;  %v170_v22 = vcombine.low %v111_v17, %v118_v19  ;;  %v451_v59 = vstv %s1812_s27  ;;  %v550_v61 = vstv %s1814_s28  ;;  %s1533_s26 = sld [smem:[#allocation10 + $0x83]] }
  0x4e   :  { %v155_v21 = vsel %vm154_vm11, %v147_v7, %v153_v18  ;;  %v460_v5 = vstv %s1818_s29  ;;  %v559_v6 = vstv %s1822_s30  ;;  %v470_v9 = vstv %s1829_s5  ;;  %s1573_s27 = sld [smem:[#allocation10 + $0xab]]  ;;  %s1540_s29 = sld [smem:[#allocation10 + $0x8a]] }
  0x4f   :  { %157 = vst [vmem:[#allocation2] sm:$0xf] %v155_v21  ;;  %v177_v25 = vrot.slane %v170_v22, %v1781_v24  ;;  %v568_v10 = vstv %s1545_s6  ;;  %v479_v15 = vstv %s1523_s8  ;;  %v577_v16 = vstv %s1503_s9  ;;  %s1524_s28 = sld [smem:[#allocation10 + $0x2b]]  ;;  %s1491_s30 = sld [smem:[#allocation10 + $0xa]] }
  0x50   :  { %v688_v19 = vstv %s1483_s0  ;;  %v692_v20 = vstv %s1532_s10  ;;  %s1560_s5 = sld [smem:[#allocation10 + $0x9e]]  ;;  %s1518_s8 = sld [smem:[#allocation10 + $0x25]]  ;;  %vm388_vm12 = vcmask 916480   ;;  %vm407_vm13 = vcmask 785408  }
  0x51   :  { %v180_v26 = vrot.slane %v177_v25, 7  ;;  %s1511_s6 = sld [smem:[#allocation10 + $0x1e]]  ;;  %s1567_s9 = sld [smem:[#allocation10 + $0xa5]]  ;;  %vm426_vm14 = vcmask 654336   ;;  %vm446_vm15 = vcmask 523264   ;;  %vm466_vm0 = vcmask 392192  }
  0x52   :  { %s1498_s0 = sld [smem:[#allocation10 + $0x11]]  ;;  %s1525_s10 = sld [smem:[#allocation10 + $0x2c]]  ;;  %vm485_vm1 = vcmask 261120   ;;  %vm520_vm2 = vcmask 629760   ;;  %vm674_vm3 = vcmask 637952   ;;  %vm828_vm4 = vcmask 646144  }
  0x53   :  { %v181_v27 = vsel %vm148_vm8, %v180_v26, %v169_v23  ;;  %vm1136_vm5 = vcmask 662528   ;;  %vm1290_vm6 = vcmask 670720   ;;  %vm528_vm7 = vcmask 416768  }
  0x54   :  { %v182_v29 = vsel %vm150_vm9, %v180_v26, %v181_v27  ;;  %v695_v27 = vstv %s1490_s11  ;;  %s1547_s11 = sld [smem:[#allocation10 + $0x91]]  ;;  %vm1444_vm8 = vcmask 678912   ;;  %vm682_vm9 = vcmask 408576  }
  0x55   :  { %v183_v30 = vsel %vm152_vm10, %v180_v26, %v182_v29  ;;  %vm836_vm10 = vcmask 400384  }
  0x56   :  { %v271_v28 = vld [vmem:[#allocation2] sm:$0xf]  ;;  %v184_v31 = vsel %vm154_vm11, %v180_v26, %v183_v30  ;;  %vm1144_vm11 = vcmask 384000  }
  0x57   :  { %272 = vst [vmem:[#allocation4 + $0x2] sm:$0xf] %v271_v28  ;;  %373 = vst [vmem:[#allocation2] sm:$0xf] %v1705_v39  ;;  %v392_v39 = vstv %s1537_s17  ;;  %v586_v28 = vstv %s1552_s12  ;;  %s1711_s17 = smov 32   ;;  %s1492_s12 = sld [smem:[#allocation10 + $0xb]] }
  0x58   :  { %186 = vst [vmem:[#allocation3] sm:$0xf] %v184_v31 }
  0x5e   :  { %v374_v34 = vld [vmem:[#allocation4] sm:$0x3f] }
  0x5f   :  { %v402_v35 = vmul.f32 %v401_v32, %v374_v34  ;;  %v383_v36 = vmul.f32 %v382_v33, %v374_v34  ;;  %v273_v37 = vld [vmem:[#allocation3] sm:$0xf]  ;;  %v421_v46 = vmul.f32 %v420_v42, %v374_v34  ;;  %v439_v48 = vld [vmem:[#allocation4 + $0x2] sm:$0x3f]  ;;  %v376_v53 = vmul.f32 %v375_v47, %v374_v34 }
  0x60   :  { %274 = vst [vmem:[#allocation5 + $0x2] sm:$0xf] %v273_v37  ;;  %v533_v50 = vld [vmem:[#allocation4] sm:$0x3f]  ;;  %v441_v56 = vmul.f32 %v440_v49, %v439_v48  ;;  %v461_v7 = vmul.f32 %v460_v5, %v439_v48  ;;  %v480_v23 = vmul.f32 %v479_v15, %v439_v48  ;;  %v596_v32 = vstv %s1850_s2  ;;  %s1505_s2 = sld [smem:[#allocation10 + $0x18]] }
  0x61   :  { %404 = vrot.lane.b32.xlu1 %v402_v35, %s1706_s20  ;;  %385 = vrot.lane.b32.xlu0 %v383_v36, %s1707_s21  ;;  %v542_v57 = vmul.f32 %v541_v51, %v533_v50  ;;  %v535_v63 = vmul.f32 %v534_v54, %v533_v50  ;;  %v560_v8 = vmul.f32 %v559_v6, %v533_v50  ;;  %v687_v17 = vld [vmem:[#allocation4] sm:$0x3f]  ;;  %v489_v33 = vstv %s1572_s14  ;;  %s1712_s14 = smov 78  }
  0x62   :  { %v689_v21 = vmul.f32 %v688_v19, %v687_v17  ;;  %v578_v25 = vmul.f32 %v577_v16, %v533_v50  ;;  %v696_v29 = vmul.f32 %v695_v27, %v687_v17  ;;  %v595_v31 = vld [vmem:[#allocation4 + $0x2] sm:$0x3f]  ;;  %v713_v36 = vstv %s1497_s15  ;;  %s1512_s15 = sld [smem:[#allocation10 + $0x1f]] }
  0x63   :  { %v597_v34 = vmul.f32 %v596_v32, %v595_v31  ;;  %v704_v37 = vstv %s1539_s16  ;;  %v606_v42 = vstv %s1559_s19  ;;  %v740_v49 = vstv %s1553_s24  ;;  %v841_v51 = vld [vmem:[#allocation4] sm:$0x3f]  ;;  %s1554_s16 = sld [smem:[#allocation10 + $0x98]]  ;;  %s1499_s19 = sld [smem:[#allocation10 + $0x12]] }
  0x64   :  { %v624_v50 = vstv %s1566_s1  ;;  %v787_v27 = vstv %s1525_s10  ;;  %v1896_v32 = vld [vmem:[#allocation4] sm:$0x3f]  ;;  %s1561_s24 = sld [smem:[#allocation10 + $0x9f]]  ;;  %s1506_s1 = sld [smem:[#allocation10 + $0x19]] }
  0x65   :  { %s1569_s10 = sld [smem:[#allocation10 + $0xa7]] }
  0x67   :  { %v378_v40 = vld [vmem:[#allocation5] sm:$0x3f] }
  0x68   :  { %v412_v43 = vmul.f32 %v411_v38, %v378_v40  ;;  %v393_v44 = vmul.f32 %v392_v39, %v378_v40  ;;  %v431_v45 = vmul.f32 %v430_v41, %v378_v40  ;;  %v1831_v58 = vld [vmem:[#allocation5 + $0x2] sm:$0x3f]  ;;  %v380_v62 = vmul.f32 %v379_v52, %v378_v40 }
  0x69   :  { %v537_v60 = vld [vmem:[#allocation5] sm:$0x3f]  ;;  %v452_v2 = vmul.f32 %v451_v59, %v1831_v58  ;;  %v471_v11 = vmul.f32 %v470_v9, %v1831_v58  ;;  %v490_v35 = vmul.f32 %v489_v33, %v1831_v58  ;;  %v714_v38 = vmul.f32 %v713_v36, %v687_v17 }
  0x6a   :  { %414 = vrot.lane.b32.xlu1 %v412_v43, %s1706_s20  ;;  %395 = vrot.lane.b32.xlu0 %v393_v44, %s1707_s21  ;;  %v539_v0 = vmul.f32 %v538_v55, %v537_v60  ;;  %v1835_v1 = vadd.f32 %v380_v62, %v376_v53  ;;  %v551_v3 = vmul.f32 %v550_v61, %v537_v60  ;;  %v1852_v18 = vld [vmem:[#allocation5] sm:$0x3f]  ;;  %v722_v40 = vstv %s1546_s18  ;;  %s1574_s18 = sld [smem:[#allocation10 + $0xac]] }
  0x6b   :  { %v569_v12 = vmul.f32 %v568_v10, %v537_v60  ;;  %v693_v22 = vmul.f32 %v692_v20, %v1852_v18  ;;  %v587_v30 = vmul.f32 %v586_v28, %v537_v60  ;;  %v705_v39 = vmul.f32 %v704_v37, %v1852_v18  ;;  %v605_v41 = vld [vmem:[#allocation5 + $0x2] sm:$0x3f] }
  0x6c   :  { %v1840_v4 = vadd.f32 %v539_v0, %v535_v63  ;;  %v723_v43 = vmul.f32 %v722_v40, %v1852_v18  ;;  %v607_v44 = vmul.f32 %v606_v42, %v605_v41  ;;  %v842_v52 = vstv %s1484_s25  ;;  %v845_v53 = vld [vmem:[#allocation5] sm:$0x3f]  ;;  %v905_v40 = vld [vmem:[#allocation4 + $0x2] sm:$0x3f]  ;;  %s1519_s25 = sld [smem:[#allocation10 + $0x26]] }
  0x6d   :  { %v1857_v26 = vadd.f32 %v693_v22, %v689_v21  ;;  %v843_v54 = vmul.f32 %v842_v52, %v841_v51  ;;  %v846_v55 = vstv %s1533_s26  ;;  %v625_v58 = vmul.f32 %v624_v50, %v605_v41  ;;  %v653_v0 = vld [vmem:[#allocation11 + $0x1] ss:$8 sm:$0x3]  ;;  %v1884_v9 = vld [vmem:[#allocation5 + $0x2] sm:$0x3f]  ;;  %s1713_s26 = smov 79  }
  0x6e   :  { %433 = vrot.lane.b32.xlu1 %v431_v45, %s1708_s4  ;;  %423 = vrot.lane.b32.xlu0 %v421_v46, %s1708_s4  ;;  %v731_v45 = vstv %s1504_s22  ;;  %v615_v46 = vstv %s1517_s23  ;;  %v658_v5 = vrot.slane %v653_v0, %v1773_v13  ;;  %v895_v42 = vld [vmem:[#allocation5 + $0x2] sm:$0xf]  ;;  %s1541_s22 = sld [smem:[#allocation10 + $0x8b]]  ;;  %s1548_s23 = sld [smem:[#allocation10 + $0x92]] }
  0x6f   :  { %v732_v47 = vmul.f32 %v731_v45, %v687_v17  ;;  %v616_v48 = vmul.f32 %v615_v46, %v595_v31  ;;  %v642_v59 = vstv %s1573_s27  ;;  %v633_v60 = vstv %s1524_s28  ;;  %s1555_s27 = sld [smem:[#allocation10 + $0x99]]  ;;  %s1568_s28 = sld [smem:[#allocation10 + $0xa6]] }
  0x70   :  { %v643_v62 = vmul.f32 %v642_v59, %v605_v41  ;;  %v634_v63 = vmul.f32 %v633_v60, %v595_v31  ;;  %v760_v10 = vstv %s1560_s5  ;;  %v778_v21 = vstv %s1567_s9  ;;  %v807_v31 = vld [vmem:[#allocation11 + $0x2] ss:$8 sm:$0x3]  ;;  %s1542_s5 = sld [smem:[#allocation10 + $0x8c]]  ;;  %s1513_s9 = sld [smem:[#allocation10 + $0x20]] }
  0x71   :  { %v761_v15 = vmul.f32 %v760_v10, %v1884_v9  ;;  %v867_v22 = vstv %s1498_s0  ;;  %v876_v28 = vstv %s1547_s11  ;;  %v1003_v33 = vstv %s1492_s12  ;;  %v1917_v60 = vld [vmem:[#allocation4 + $0x2] sm:$0x3f]  ;;  %s1520_s0 = sld [smem:[#allocation10 + $0x27]]  ;;  %s1500_s11 = sld [smem:[#allocation10 + $0x13]] }
  0x72   :  { %443 = vrot.lane.b32.xlu1 %v441_v56, %s1709_s7  ;;  %544 = vrot.lane.b32.xlu0 %v542_v57, %s1707_s21  ;;  %v847_v56 = vmul.f32 %v846_v55, %v845_v53  ;;  %v741_v57 = vmul.f32 %v740_v49, %v1852_v18  ;;  %v769_v18 = vstv %s1518_s8  ;;  %v812_v36 = vrot.slane %v807_v31, %v1773_v13  ;;  %s1562_s8 = sld [smem:[#allocation10 + $0xa0]]  ;;  %s1527_s12 = sld [smem:[#allocation10 + $0x2e]] }
  0x73   :  { %v1004_v37 = vmul.f32 %v1003_v33, %v1896_v32  ;;  %v906_v41 = vstv %s1512_s15  ;;  %v1021_v50 = vstv %s1499_s19  ;;  %s1507_s15 = sld [smem:[#allocation10 + $0x1a]]  ;;  %s1973_s19 = sld [smem:[#allocation10 + $0xae]] }
  0x74   :  { %v1876_v61 = vadd.f32 %v847_v56, %v843_v54  ;;  %v1012_v52 = vstv %s1541_s22  ;;  %v1030_v55 = vstv %s1548_s23  ;;  %v915_v56 = vld [vmem:[#allocation5 + $0x2] sm:$0x3f]  ;;  %s1989_s22 = sld [smem:[#allocation10 + $0x14]]  ;;  %s1991_s23 = sld [smem:[#allocation10 + $0x8d]] }
  0x76   :  { %454 = vrot.lane.b32.xlu1 %v452_v2, %s1709_s7  ;;  %553 = vrot.lane.b32.xlu0 %v551_v3, %s1707_s21  ;;  %v858_v2 = vstv %s1540_s29  ;;  %v849_v3 = vstv %s1491_s30  ;;  %s1575_s29 = sld [smem:[#allocation10 + $0xad]] }
  0x77   :  { %v859_v6 = vmul.f32 %v858_v2, %v845_v53  ;;  %s1526_s30 = sld [smem:[#allocation10 + $0x2d]] }
  0x7a   :  { %463 = vrot.lane.b32.xlu1 %v461_v7, %s1710_s13  ;;  %562 = vrot.lane.b32.xlu0 %v560_v8, %s1706_s20  ;;  %v850_v7 = vmul.f32 %v849_v3, %v841_v51  ;;  %v662_v8 = vrot.slane %v653_v0, %v1775_v14  ;;  %v1922_v3 = vld [vmem:[#allocation5 + $0x2] sm:$0x3f] }
  0x7c   :  { %v663_v17 = vcombine.low %v658_v5, %v662_v8  ;;  %v1050_v5 = vstv %s1555_s27  ;;  %s1714_s27 = smov 81  }
  0x7d   :  { %v943_v10 = vstv %s1526_s30  ;;  %s2048_s30 = sld [smem:[#allocation10 + $0x22]] }
  0x7e   :  { %473 = vrot.lane.b32.xlu1 %v471_v11, %s1710_s13  ;;  %571 = vrot.lane.b32.xlu0 %v569_v12, %s1706_s20  ;;  %v749_v11 = vld [vmem:[#allocation4 + $0x2] sm:$0x3f]  ;;  %v750_v12 = vstv %s1511_s6  ;;  %v670_v20 = vrot.slane %v663_v17, %v1781_v24  ;;  %s1493_s6 = sld [smem:[#allocation10 + $0xc]]  ;;  %v1166_v17 = vstv %s1542_s5  ;;  %s2059_s5 = sld [smem:[#allocation10 + $0x2f]] }
  0x7f   :  { %v751_v16 = vmul.f32 %v750_v12, %v749_v11  ;;  %v770_v19 = vmul.f32 %v769_v18, %v749_v11  ;;  %v944_v12 = vmul.f32 %v943_v10, %v905_v40  ;;  %v1931_v18 = vld [vmem:[#allocation4] sm:$0x3f] }
  0x82   :  { %482 = vrot.lane.b32.xlu1 %v480_v23, %s1711_s17  ;;  %580 = vrot.lane.b32.xlu0 %v578_v25, %s1708_s4  ;;  %v779_v23 = vmul.f32 %v778_v21, %v1884_v9  ;;  %v868_v25 = vmul.f32 %v867_v22, %v841_v51  ;;  %v1909_v51 = vld [vmem:[#allocation5] sm:$0x3f] }
  0x83   :  { %v1013_v54 = vmul.f32 %v1012_v52, %v1909_v51 }
  0x86   :  { %698 = vrot.lane.b32.xlu1 %v696_v29, %s1707_s21  ;;  %589 = vrot.lane.b32.xlu0 %v587_v30, %s1708_s4  ;;  %v788_v29 = vmul.f32 %v787_v27, %v749_v11  ;;  %v877_v30 = vmul.f32 %v876_v28, %v845_v53  ;;  %v1022_v53 = vmul.f32 %v1021_v50, %v1896_v32  ;;  %v1068_v27 = vstv %s1562_s8  ;;  %v1969_v50 = vld [vmem:[#allocation4] sm:$0x3f]  ;;  %s2080_s8 = sld [smem:[#allocation10 + $0xa9]] }
  0x87   :  { %v1059_v28 = vstv %s1513_s9  ;;  %s2104_s9 = sld [smem:[#allocation10 + $0x29]] }
  0x88   :  { %v1060_v33 = vmul.f32 %v1059_v28, %v1917_v60 }
  0x8a   :  { %599 = vrot.lane.b32.xlu1 %v597_v34, %s1709_s7  ;;  %492 = vrot.lane.b32.xlu0 %v490_v35, %s1711_s17  ;;  %v885_v34 = vld [vmem:[#allocation4 + $0x2] sm:$0xf]  ;;  %v886_v35 = vstv %s1505_s2  ;;  %s1549_s2 = sld [smem:[#allocation10 + $0x93]] }
  0x8e   :  { %716 = vrot.lane.b32.xlu1 %v714_v38, %s1706_s20  ;;  %707 = vrot.lane.b32.xlu0 %v705_v39, %s1707_s21  ;;  %v887_v38 = vmul.f32 %v886_v35, %v885_v34  ;;  %v816_v39 = vrot.slane %v807_v31, %v1775_v14  ;;  %v1069_v31 = vmul.f32 %v1068_v27, %v1922_v3  ;;  %v1077_v35 = vstv %s1520_s0  ;;  %v2017_v27 = vld [vmem:[#allocation5] sm:$0x3f]  ;;  %s1716_s0 = smov 51  }
  0x90   :  { %v817_v46 = vcombine.low %v812_v36, %v816_v39  ;;  %v1078_v36 = vmul.f32 %v1077_v35, %v1917_v60  ;;  %v1175_v39 = vstv %s1500_s11  ;;  %s1485_s11 = sld [smem:[#allocation10 + $0x4]] }
  0x92   :  { %725 = vrot.lane.b32.xlu1 %v723_v43, %s1706_s20  ;;  %609 = vrot.lane.b32.xlu0 %v607_v44, %s1709_s7  ;;  %v896_v43 = vstv %s1554_s16  ;;  %v907_v44 = vmul.f32 %v906_v41, %v905_v40  ;;  %s1957_s16 = sld [smem:[#allocation10 + $0x21]] }
  0x93   :  { %v897_v45 = vmul.f32 %v896_v43, %v895_v42  ;;  %v1176_v43 = vmul.f32 %v1175_v39, %v1931_v18 }
  0x96   :  { %734 = vrot.lane.b32.xlu1 %v732_v47, %s1708_s4  ;;  %618 = vrot.lane.b32.xlu0 %v616_v48, %s1710_s13  ;;  %v796_v47 = vstv %s1574_s18  ;;  %v824_v48 = vrot.slane %v817_v46, %v1781_v24  ;;  %s1959_s18 = sld [smem:[#allocation10 + $0x9a]] }
  0x97   :  { %v797_v49 = vmul.f32 %v796_v47, %v1884_v9  ;;  %v952_v9 = vstv %s1575_s29  ;;  %s2040_s29 = sld [smem:[#allocation10 + $0xa8]] }
  0x98   :  { %v953_v11 = vmul.f32 %v952_v9, %v915_v56 }
  0x9a   :  { %743 = vrot.lane.b32.xlu1 %v741_v57, %s1708_s4  ;;  %627 = vrot.lane.b32.xlu0 %v625_v58, %s1710_s13  ;;  %v916_v57 = vstv %s1561_s24  ;;  %v1031_v58 = vmul.f32 %v1030_v55, %v1909_v51  ;;  %v1115_v55 = vld [vmem:[#allocation11 + $0x4] ss:$8 sm:$0x3]  ;;  %s2003_s24 = sld [smem:[#allocation10 + $0x94]] }
  0x9b   :  { %v917_v59 = vmul.f32 %v916_v57, %v915_v56 }
  0x9e   :  { %645 = vrot.lane.b32.xlu1 %v643_v62, %s1711_s17  ;;  %636 = vrot.lane.b32.xlu0 %v634_v63, %s1711_s17  ;;  %v1040_v62 = vstv %s1506_s1  ;;  %v925_v63 = vstv %s1519_s25  ;;  %s2005_s1 = sld [smem:[#allocation10 + $0xa1]]  ;;  %s2022_s25 = sld [smem:[#allocation10 + $0x1b]] }
  0x9f   :  { %v1041_v0 = vmul.f32 %v1040_v62, %v1917_v60  ;;  %v926_v2 = vmul.f32 %v925_v63, %v905_v40  ;;  %v1120_v62 = vrot.slane %v1115_v55, %v1773_v13  ;;  %v1124_v63 = vrot.slane %v1115_v55, %v1775_v14 }
  0xa2   :  { %861 = vrot.lane.b32.xlu1 %v859_v6, %s1707_s21  ;;  %852 = vrot.lane.b32.xlu0 %v850_v7, %s1707_s21  ;;  %v934_v6 = vstv %s1568_s28  ;;  %v1051_v7 = vmul.f32 %v1050_v5, %v1922_v3  ;;  %v1204_v5 = vstv %s1959_s18  ;;  %s2038_s28 = sld [smem:[#allocation10 + $0x9b]]  ;;  %s1720_s18 = smov 47  }
  0xa3   :  { %v935_v8 = vmul.f32 %v934_v6, %v915_v56 }
  0xa4   :  { %v1222_v39 = vstv %s2005_s1 }
  0xa6   :  { %763 = vrot.lane.b32.xlu1 %v761_v15, %s1709_s7  ;;  %753 = vrot.lane.b32.xlu0 %v751_v16, %s1709_s7  ;;  %v963_v15 = vld [vmem:[#allocation11 + $0x3] ss:$8 sm:$0x3] }
  0xa7   :  { %v1929_v16 = vld [vmem:[#allocation5] sm:$0x3f]  ;;  %v968_v21 = vrot.slane %v963_v15, %v1773_v13 }
  0xa8   :  { %v1167_v22 = vmul.f32 %v1166_v17, %v1929_v16 }
  0xaa   :  { %772 = vrot.lane.b32.xlu1 %v770_v19, %s1710_s13  ;;  %671 = vrot.lane.b32.xlu0 %v670_v20, %s1712_s14  ;;  %v1157_v19 = vstv %s1493_s6  ;;  %s1494_s14 = sld [smem:[#allocation10 + $0xd]]  ;;  %s2068_s6 = sld [smem:[#allocation10 + $0xaf]] }
  0xae   :  { %781 = vrot.lane.b32.xlu1 %v779_v23, %s1710_s13  ;;  %870 = vrot.lane.b32.xlu0 %v868_v25, %s1706_s20  ;;  %v1158_v23 = vmul.f32 %v1157_v19, %v1931_v18  ;;  %v972_v25 = vrot.slane %v963_v15, %v1775_v14  ;;  %v1104_v15 = vstv %s1973_s19  ;;  %s1721_s19 = smov 46  }
  0xb0   :  { %v973_v34 = vcombine.low %v968_v21, %v972_v25  ;;  %v1311_v52 = vstv %s1494_s14  ;;  %v1105_v25 = vmul.f32 %v1104_v15, %v1922_v3  ;;  %s1486_s14 = sld [smem:[#allocation10 + $0x5]] }
  0xb2   :  { %790 = vrot.lane.b32.xlu1 %v788_v29, %s1711_s17  ;;  %879 = vrot.lane.b32.xlu0 %v877_v30, %s1706_s20  ;;  %v1933_v20 = vpop.permute.xlu1 %517 }
  0xb6   :  { %1006 = vrot.lane.b32.xlu1 %v1004_v37, %s1707_s21  ;;  %889 = vrot.lane.b32.xlu0 %v887_v38, %s1708_s4  ;;  %v980_v37 = vrot.slane %v973_v34, %v1781_v24  ;;  %v1086_v38 = vstv %s1569_s10  ;;  %s1717_s10 = smov 83  }
  0xb7   :  { %v1087_v42 = vmul.f32 %v1086_v38, %v1922_v3  ;;  %v1338_v38 = vstv %s2003_s24 }
  0xba   :  { %909 = vrot.lane.b32.xlu1 %v907_v44, %s1709_s7  ;;  %899 = vrot.lane.b32.xlu0 %v897_v45, %s1708_s4  ;;  %v1095_v44 = vstv %s1527_s12  ;;  %v1184_v45 = vstv %s1549_s2  ;;  %s1534_s12 = sld [smem:[#allocation10 + $0x84]]  ;;  %s1719_s2 = smov 49  }
  0xbe   :  { %825 = vrot.lane.b32.xlu1 %v824_v48, %s1713_s26  ;;  %799 = vrot.lane.b32.xlu0 %v797_v49, %s1711_s17  ;;  %v1096_v48 = vmul.f32 %v1095_v44, %v1917_v60  ;;  %v1185_v49 = vmul.f32 %v1184_v45, %v1929_v16  ;;  %v1983_v60 = vld [vmem:[#allocation5 + $0x2] sm:$0x3f]  ;;  %s2024_s26 = sld [smem:[#allocation10 + $0x28]] }
  0xbf   :  { %v1205_v10 = vmul.f32 %v1204_v5, %v1983_v60  ;;  %v1223_v45 = vmul.f32 %v1222_v39, %v1983_v60  ;;  %v1358_v5 = vstv %s2038_s28 }
  0xc2   :  { %1024 = vrot.lane.b32.xlu1 %v1022_v53, %s1706_s20  ;;  %1015 = vrot.lane.b32.xlu0 %v1013_v54, %s1707_s21  ;;  %v1971_v53 = vld [vmem:[#allocation4 + $0x2] sm:$0x3f]  ;;  %v1194_v54 = vstv %s1507_s15  ;;  %s1535_s15 = sld [smem:[#allocation10 + $0x85]] }
  0xc6   :  { %1033 = vrot.lane.b32.xlu1 %v1031_v58, %s1706_s20  ;;  %919 = vrot.lane.b32.xlu0 %v917_v59, %s1709_s7  ;;  %v1312_v58 = vmul.f32 %v1311_v52, %v1969_v50  ;;  %v1195_v59 = vmul.f32 %v1194_v54, %v1971_v53  ;;  %v1348_v52 = vstv %s2022_s25  ;;  %v1231_v54 = vstv %s2024_s26 }
  0xca   :  { %1043 = vrot.lane.b32.xlu1 %v1041_v0, %s1708_s4  ;;  %928 = vrot.lane.b32.xlu0 %v926_v2, %s1710_s13  ;;  %v1213_v2 = vstv %s1957_s16  ;;  %s1536_s16 = sld [smem:[#allocation10 + $0x86]] }
  0xcb   :  { %v1214_v9 = vmul.f32 %v1213_v2, %v1971_v53  ;;  %v2076_v2 = vld [vmem:[#allocation5 + $0x2] sm:$0x3f] }
  0xce   :  { %1053 = vrot.lane.b32.xlu1 %v1051_v7, %s1708_s4  ;;  %937 = vrot.lane.b32.xlu0 %v935_v8, %s1710_s13 }
  0xd2   :  { %955 = vrot.lane.b32.xlu1 %v953_v11, %s1711_s17  ;;  %946 = vrot.lane.b32.xlu0 %v944_v12, %s1711_s17  ;;  %v1125_v11 = vcombine.low %v1120_v62, %v1124_v63  ;;  %v1232_v63 = vmul.f32 %v1231_v54, %v1971_v53 }
  0xd3   :  { %v1943_v29 = vpop.permute.xlu1 %404  ;;  %v386_v30 = vpop.permute.xlu0 %385 }
  0xd4   :  { %v387_v0 = vrot.slane %v386_v30, 2  ;;  %v406_v28 = vrot.slane %v1943_v29, 2 }
  0xd6   :  { %1169 = vrot.lane.b32.xlu1 %v1167_v22, %s1707_s21  ;;  %1160 = vrot.lane.b32.xlu0 %v1158_v23, %s1707_s21  ;;  %v389_v12 = vsel %vm388_vm12, %v386_v30, %v387_v0  ;;  %v1132_v23 = vrot.slane %v1125_v11, %v1781_v24  ;;  %v1329_v30 = vstv %s1989_s22  ;;  %s1722_s22 = smov 45  }
  0xd7   :  { %v391_v22 = vadd.f32 %v389_v12, %v1835_v1  ;;  %v1330_v35 = vmul.f32 %v1329_v30, %v1969_v50 }
  0xda   :  { %1071 = vrot.lane.b32.xlu1 %v1069_v31, %s1709_s7  ;;  %1062 = vrot.lane.b32.xlu0 %v1060_v33, %s1709_s7  ;;  %v1320_v31 = vstv %s1991_s23  ;;  %s1723_s23 = smov [#allocation13]  }
  0xdb   :  { %s1471_s24 = sshll.u32 %s1723_s23, 4  ;;  %s1472_s24 = int_to_ptr.vmem [resolvable:$true] %s1471_s24 }
  0xdc   :  { %v1951_v40 = vpop.permute.xlu1 %414  ;;  %v396_v41 = vpop.permute.xlu0 %395  ;;  %s1668_s1 = scalar_lea.vmem %s1472_s24, 64  ;;  %p1673_p8 = scmp.lt.s32.totalorder %s1472_s24, %s1472_s24 }
  0xdd   :  { %v397_v8 = vrot.slane %v396_v41, 2  ;;  %v416_v3 = vrot.slane %v1951_v40, 2  ;;  %p1669_p7 = scmp.ne.s32.totalorder %s1472_s24, %s1668_s1  ;;  %p1674_p9 = scmp.lt.s32.totalorder %s1668_s1, %s1668_s1 }
  0xde   :  { %1080 = vrot.lane.b32.xlu1 %v1078_v36, %s1710_s13  ;;  %981 = vrot.lane.b32.xlu0 %v980_v37, %s1708_s4  ;;  %v1321_v36 = vmul.f32 %v1320_v31, %v2017_v27  ;;  %v408_v37 = vsel %vm407_vm13, %v1943_v29, %v406_v28  ;;  %v1339_v29 = vmul.f32 %v1338_v38, %v2017_v27  ;;  %v1269_v28 = vld [vmem:[#allocation11 + $0x5] ss:$8 sm:$0x3]  ;;  %v1258_v38 = vstv %s2068_s6 }
  0xdf   :  { %v398_v21 = vsel %vm388_vm12, %v396_v41, %v397_v8  ;;  %v417_v44 = vsel %vm407_vm13, %v1951_v40, %v416_v3  ;;  %v1240_v8 = vstv %s2040_s29  ;;  %p1675_p10 = por %p1674_p9, %p1673_p8 }
  0xe0   :  { %v1961_v46 = vpop.permute.xlu1 %433  ;;  %v1963_v47 = vpop.permute.xlu0 %423  ;;  %v400_v1 = vadd.f32 %v398_v21, %v391_v22  ;;  %v1367_v21 = vstv %s2048_s30  ;;  %v1241_v22 = vmul.f32 %v1240_v8, %v1983_v60 }
  0xe1   :  { %p1676_p11 = pnand %p1675_p10, %p1669_p7 }
  0xe2   :  { %1089 = vrot.lane.b32.xlu1 %v1087_v42, %s1710_s13  ;;  %1178 = vrot.lane.b32.xlu0 %v1176_v43, %s1706_s20  ;;  %v410_v41 = vadd.f32 %v408_v37, %v400_v1 }
  0xe4   :  { %v1975_v56 = vpop.permute.xlu1 %443  ;;  %v1977_v57 = vpop.permute.xlu0 %544  ;;  %v419_v40 = vadd.f32 %v417_v44, %v410_v41  ;;  %v1274_v41 = vrot.slane %v1269_v28, %v1773_v13  ;;  %v1278_v44 = vrot.slane %v1269_v28, %v1775_v14 }
  0xe5   :  { %v445_v15 = vrot.slane %v1975_v56, 6 }
  0xe6   :  { %1098 = vrot.lane.b32.xlu1 %v1096_v48, %s1711_s17  ;;  %1187 = vrot.lane.b32.xlu0 %v1185_v49, %s1706_s20  ;;  %v425_v48 = vrot.slane %v1963_v47, 2  ;;  %v2055_v49 = vld [vmem:[#allocation4 + $0x2] sm:$0x3f]  ;;  %v1279_v8 = vcombine.low %v1274_v41, %v1278_v44 }
  0xe7   :  { %v1349_v62 = vmul.f32 %v1348_v52, %v2055_v49  ;;  %v1368_v1 = vmul.f32 %v1367_v21, %v2055_v49 }
  0xe8   :  { %v1993_v6 = vpop.permute.xlu1 %454  ;;  %v1995_v7 = vpop.permute.xlu0 %553  ;;  %v427_v0 = vsel %vm426_vm14, %v1963_v47, %v425_v48  ;;  %v1359_v47 = vmul.f32 %v1358_v5, %v2076_v2  ;;  %v1394_v48 = vstv %s2080_s8 }
  0xe9   :  { %v555_v37 = vrot.slane %v1995_v7, 2 }
  0xea   :  { %1314 = vrot.lane.b32.xlu1 %v1312_v58, %s1707_s21  ;;  %1197 = vrot.lane.b32.xlu0 %v1195_v59, %s1708_s4  ;;  %v435_v59 = vrot.slane %v1961_v46, 2 }
  0xec   :  { %v2007_v17 = vpop.permute.xlu1 %463  ;;  %v2009_v19 = vpop.permute.xlu0 %562  ;;  %v436_v12 = vsel %vm426_vm14, %v1961_v46, %v435_v59  ;;  %v1259_v59 = vmul.f32 %v1258_v38, %v1983_v60  ;;  %v1395_v60 = vmul.f32 %v1394_v48, %v2076_v2 }
  0xee   :  { %1216 = vrot.lane.b32.xlu1 %v1214_v9, %s1709_s7  ;;  %1207 = vrot.lane.b32.xlu0 %v1205_v10, %s1708_s4  ;;  %v429_v9 = vadd.f32 %v427_v0, %v419_v40 }
  0xf0   :  { %v2026_v33 = vpop.permute.xlu1 %473  ;;  %v2028_v34 = vpop.permute.xlu0 %571  ;;  %v438_v30 = vadd.f32 %v436_v12, %v429_v9 }
  0xf1   :  { %v573_v0 = vrot.slane %v2028_v34, 2 }
  0xf2   :  { %1133 = vrot.lane.b32.xlu1 %v1132_v23, %s1714_s27  ;;  %1107 = vrot.lane.b32.xlu0 %v1105_v25, %s1711_s17  ;;  %v546_v23 = vrot.slane %v1977_v57, 2  ;;  %v1249_v25 = vstv %s2059_s5 }
  0xf3   :  { %v1250_v39 = vmul.f32 %v1249_v25, %v1971_v53 }
  0xf4   :  { %v2042_v42 = vpop.permute.xlu1 %482  ;;  %v2044_v43 = vpop.permute.xlu0 %580 }
  0xf5   :  { %v484_v9 = vrot.slane %v2042_v42, 6 }
  0xf6   :  { %1332 = vrot.lane.b32.xlu1 %v1330_v35, %s1706_s20  ;;  %1323 = vrot.lane.b32.xlu0 %v1321_v36, %s1707_s21  ;;  %s2065_s21 = sld [smem:[#allocation10 + $0xa2]]  ;;  %v447_v35 = vsel %vm446_vm15, %v445_v15, %v1975_v56  ;;  %v456_v36 = vrot.slane %v1993_v6, 6  ;;  %v465_v56 = vrot.slane %v2007_v17, 6 }
  0xf7   :  { %v449_v52 = vadd.f32 %v447_v35, %v438_v30  ;;  %v1423_v35 = vld [vmem:[#allocation11 + $0x6] ss:$8 sm:$0x3] }
  0xf8   :  { %v2061_v55 = vpop.permute.xlu1 %698  ;;  %v2063_v58 = vpop.permute.xlu0 %589 }
  0xf9   :  { %v591_v28 = vrot.slane %v2063_v58, 2 }
  0xfa   :  { %1341 = vrot.lane.b32.xlu1 %v1339_v29, %s1706_s20  ;;  %1225 = vrot.lane.b32.xlu0 %v1223_v45, %s1709_s7  ;;  %s2102_s20 = sld [smem:[#allocation10 + $0xb0]]  ;;  %v547_v29 = vsel %vm388_vm12, %v1977_v57, %v546_v23  ;;  %v564_v45 = vrot.slane %v2009_v19, 2  ;;  %v556_v57 = vsel %vm388_vm12, %v1995_v7, %v555_v37  ;;  %v1385_v23 = vstv %s2104_s9 }
  0xfb   :  { %v549_v5 = vadd.f32 %v547_v29, %v1840_v4  ;;  %v582_v4 = vrot.slane %v2044_v43, 2  ;;  %v1386_v29 = vmul.f32 %v1385_v23, %v2055_v49 }
  0xfc   :  { %v2082_v10 = vpop.permute.xlu1 %599  ;;  %v2084_v11 = vpop.permute.xlu0 %492  ;;  %v1376_v3 = vstv %s2065_s21  ;;  %v565_v7 = vsel %vm407_vm13, %v2009_v19, %v564_v45  ;;  %v1428_v45 = vrot.slane %v1423_v35, %v1773_v13 }
  0xfd   :  { %v1377_v53 = vmul.f32 %v1376_v3, %v2076_v2  ;;  %v558_v15 = vadd.f32 %v556_v57, %v549_v5  ;;  %v494_v19 = vrot.slane %v2084_v11, 6  ;;  %v1286_v3 = vrot.slane %v1279_v8, %v1781_v24 }
  0xfe   :  { %1351 = vrot.lane.b32.xlu1 %v1349_v62, %s1708_s4  ;;  %1234 = vrot.lane.b32.xlu0 %v1232_v63, %s1710_s13  ;;  %v457_v62 = vsel %vm446_vm15, %v456_v36, %v1993_v6  ;;  %v475_v63 = vrot.slane %v2026_v33, 6  ;;  %v467_v6 = vsel %vm466_vm0, %v465_v56, %v2007_v17  ;;  %v574_v17 = vsel %vm407_vm13, %v2028_v34, %v573_v0 }
  0xff   :  { %v459_v12 = vadd.f32 %v457_v62, %v449_v52  ;;  %v486_v36 = vsel %vm485_vm1, %v484_v9, %v2042_v42  ;;  %v601_v34 = vrot.slane %v2082_v10, 6  ;;  %v592_v56 = vsel %vm426_vm14, %v2063_v58, %v591_v28 }
 0x100   :  { %v2096_v31 = vpop.permute.xlu1 %716  ;;  %v2098_v46 = vpop.permute.xlu0 %707  ;;  %v476_v25 = vsel %vm466_vm0, %v475_v63, %v2026_v33  ;;  %v583_v33 = vsel %vm426_vm14, %v2044_v43, %v582_v4  ;;  %v495_v42 = vsel %vm485_vm1, %v494_v19, %v2084_v11  ;;  %v700_v58 = vrot.slane %v2061_v55, 2 }
 0x101   :  { %v469_v30 = vadd.f32 %v467_v6, %v459_v12  ;;  %v602_v11 = vsel %vm446_vm15, %v601_v34, %v2082_v10  ;;  %v709_v5 = vrot.slane %v2098_v46, 2 }
 0x102   :  { %1361 = vrot.lane.b32.xlu1 %v1359_v47, %s1708_s4  ;;  %1243 = vrot.lane.b32.xlu0 %v1241_v22, %s1710_s13  ;;  %s2137_s4 = sld [smem:[#allocation10 + $0x30]]  ;;  %v1412_v22 = vstv %s2102_s20  ;;  %v701_v9 = vsel %vm388_vm12, %v2061_v55, %v700_v58 }
 0x103   :  { %v478_v37 = vadd.f32 %v476_v25, %v469_v30  ;;  %v1413_v44 = vmul.f32 %v1412_v22, %v2076_v2  ;;  %v1432_v2 = vrot.slane %v1423_v35, %v1775_v14  ;;  %v718_v25 = vrot.slane %v2096_v31, 2 }
 0x104   :  { %v2121_v54 = vpop.permute.xlu1 %725  ;;  %v2123_v40 = vpop.permute.xlu0 %609 }
 0x105   :  { %v611_v43 = vrot.slane %v2123_v40, 6  ;;  %v488_v48 = vadd.f32 %v486_v36, %v478_v37  ;;  %v1433_v10 = vcombine.low %v1428_v45, %v1432_v2  ;;  %v727_v36 = vrot.slane %v2121_v54, 2 }
 0x106   :  { %1370 = vrot.lane.b32.xlu1 %v1368_v1, %s1709_s7  ;;  %1252 = vrot.lane.b32.xlu0 %v1250_v39, %s1711_s17  ;;  %v567_v1 = vadd.f32 %v565_v7, %v558_v15 }
 0x107   :  { %v497_v13 = vadd.f32 %v495_v42, %v488_v48  ;;  %v1440_v55 = vrot.slane %v1433_v10, %v1781_v24 }
 0x108   :  { %v2145_v21 = vpop.permute.xlu1 %734  ;;  %v619_v47 = vpop.permute.xlu0 %618  ;;  %v576_v38 = vadd.f32 %v574_v17, %v567_v1 }
 0x109   :  { %v620_v62 = vrot.slane %v619_v47, 6 }
 0x10a   :  { %1379 = vrot.lane.b32.xlu1 %v1377_v53, %s1709_s7  ;;  %1261 = vrot.lane.b32.xlu0 %v1259_v59, %s1711_s17  ;;  %v585_v52 = vadd.f32 %v583_v33, %v576_v38  ;;  %s1715_s7 = smov 82   ;;  %v1403_v53 = vstv %s2137_s4  ;;  %v519_v59 = vrot.slane %v1933_v20, 6  ;;  %v736_v33 = vrot.slane %v2145_v21, 2 }
 0x10b   :  { %v1404_v6 = vmul.f32 %v1403_v53, %v2055_v49  ;;  %v621_v4 = vsel %vm466_vm0, %v620_v62, %v619_v47  ;;  %v710_v49 = vsel %vm388_vm12, %v2098_v46, %v709_v5  ;;  %v719_v46 = vsel %vm407_vm13, %v2096_v31, %v718_v25 }
 0x10c   :  { %v2163_v39 = vpop.permute.xlu1 %743  ;;  %v628_v41 = vpop.permute.xlu0 %627  ;;  %v594_v57 = vadd.f32 %v592_v56, %v585_v52  ;;  %v521_v7 = vsel %vm520_vm2, %v519_v59, %v1933_v20  ;;  %v703_v20 = vadd.f32 %v701_v9, %v1857_v26  ;;  %v737_v56 = vsel %vm426_vm14, %v2145_v21, %v736_v33 }
 0x10d   :  { %v629_v8 = vrot.slane %v628_v41, 6  ;;  %v523_v23 = vmul.f32 %v521_v7, %v497_v13 }
 0x10e   :  { %1397 = vrot.lane.b32.xlu1 %v1395_v60, %s1710_s13  ;;  %1287 = vrot.lane.b32.xlu0 %v1286_v3, %s1715_s7  ;;  %v612_v60 = vsel %vm446_vm15, %v611_v43, %v2123_v40  ;;  %v604_v14 = vadd.f32 %v602_v11, %v594_v57  ;;  %v712_v30 = vadd.f32 %v710_v49, %v703_v20 }
 0x10f   :  { %v630_v17 = vsel %vm466_vm0, %v629_v8, %v628_v41  ;;  %v728_v41 = vsel %vm407_vm13, %v2121_v54, %v727_v36 }
 0x110   :  { %v646_v63 = vpop.permute.xlu1 %645  ;;  %v637_v0 = vpop.permute.xlu0 %636  ;;  %v614_v15 = vadd.f32 %v612_v60, %v604_v14  ;;  %v721_v24 = vadd.f32 %v719_v46, %v712_v30 }
 0x111   :  { %v638_v12 = vrot.slane %v637_v0, 6  ;;  %v647_v47 = vrot.slane %v646_v63, 6 }
 0x112   :  { %1415 = vrot.lane.b32.xlu1 %v1413_v44, %s1711_s17  ;;  %1388 = vrot.lane.b32.xlu0 %v1386_v29, %s1710_s13  ;;  %v623_v28 = vadd.f32 %v621_v4, %v614_v15  ;;  %v745_v44 = vrot.slane %v2163_v39, 2  ;;  %v730_v45 = vadd.f32 %v728_v41, %v721_v24 }
 0x113   :  { %v639_v19 = vsel %vm485_vm1, %v638_v12, %v637_v0  ;;  %v648_v34 = vsel %vm485_vm1, %v647_v47, %v646_v63 }
 0x114   :  { %v2190_v22 = vpop.permute.xlu1 %861  ;;  %v2192_v40 = vpop.permute.xlu0 %852  ;;  %v632_v1 = vadd.f32 %v630_v17, %v623_v28  ;;  %v746_v2 = vsel %vm426_vm14, %v2163_v39, %v745_v44  ;;  %v739_v59 = vadd.f32 %v737_v56, %v730_v45 }
 0x115   :  { %v854_v4 = vrot.slane %v2192_v40, 2  ;;  %v863_v28 = vrot.slane %v2190_v22, 2 }
 0x116   :  { %1406 = vrot.lane.b32.xlu0 %v1404_v6, %s1711_s17  ;;  %525 = vrot.lane.b32.xlu1 %v523_v23, %s1716_s0  ;;  %v641_v26 = vadd.f32 %v639_v19, %v632_v1  ;;  %s1718_s17 = smov 50   ;;  %v748_v11 = vadd.f32 %v746_v2, %v739_v59 }
 0x118   :  { %v764_v3 = vpop.permute.xlu1 %763  ;;  %v754_v35 = vpop.permute.xlu0 %753  ;;  %v650_v31 = vadd.f32 %v648_v34, %v641_v26  ;;  %v864_v26 = vsel %vm388_vm12, %v2190_v22, %v863_v28 }
 0x119   :  { %v755_v42 = vrot.slane %v754_v35, 6  ;;  %v765_v54 = vrot.slane %v764_v3, 6 }
 0x11a   :  { %1441 = vrot.lane.b32.xlu0 %v1440_v55, %s1717_s10  ;;  %v855_v55 = vsel %vm388_vm12, %v2192_v40, %v854_v4 }
 0x11b   :  { %v756_v58 = vsel %vm446_vm15, %v755_v42, %v754_v35  ;;  %v766_v21 = vsel %vm446_vm15, %v765_v54, %v764_v3  ;;  %v857_v46 = vadd.f32 %v855_v55, %v1876_v61  ;;  %v996_v42 = vstv %s1485_s11 }
 0x11c   :  { %v773_v37 = vpop.permute.xlu1 %772  ;;  %v672_v38 = vpop.permute.xlu0 %671  ;;  %v758_v13 = vadd.f32 %v756_v58, %v748_v11  ;;  %v997_v54 = vmul.f32 %v996_v42, %v1896_v32 }
 0x11d   :  { %v673_v29 = vrot.slane %v672_v38, 6  ;;  %v774_v63 = vrot.slane %v773_v37, 6 }
 0x11e   :  { %v768_v8 = vadd.f32 %v766_v21, %v758_v13 }
 0x11f   :  { %v675_v43 = vsel %vm674_vm3, %v673_v29, %v672_v38  ;;  %v775_v39 = vsel %vm466_vm0, %v774_v63, %v773_v37  ;;  %v866_v38 = vadd.f32 %v864_v26, %v857_v46 }
 0x120   :  { %v677_v48 = vmul.f32 %v675_v43, %v650_v31  ;;  %v782_v52 = vpop.permute.xlu1 %781  ;;  %v871_v53 = vpop.permute.xlu0 %870  ;;  %v777_v9 = vadd.f32 %v775_v39, %v768_v8  ;;  %v1000_v43 = vstv %s1534_s12 }
 0x121   :  { %v783_v60 = vrot.slane %v782_v52, 6  ;;  %v872_v35 = vrot.slane %v871_v53, 2  ;;  %v1001_v58 = vmul.f32 %v1000_v43, %v1909_v51 }
 0x122   :  { %679 = vrot.lane.b32.xlu0 %v677_v48, %s1718_s17 }
 0x123   :  { %v784_v7 = vsel %vm466_vm0, %v783_v60, %v782_v52  ;;  %v873_v40 = vsel %vm407_vm13, %v871_v53, %v872_v35  ;;  %v1002_v39 = vadd.f32 %v1001_v58, %v997_v54 }
 0x124   :  { %v791_v62 = vpop.permute.xlu1 %790  ;;  %v880_v57 = vpop.permute.xlu0 %879  ;;  %v786_v15 = vadd.f32 %v784_v7, %v777_v9  ;;  %v875_v29 = vadd.f32 %v873_v40, %v866_v38 }
 0x125   :  { %v792_v14 = vrot.slane %v791_v62, 6  ;;  %v881_v33 = vrot.slane %v880_v57, 2 }
 0x127   :  { %v793_v12 = vsel %vm485_vm1, %v792_v14, %v791_v62  ;;  %v882_v41 = vsel %vm407_vm13, %v880_v57, %v881_v33 }
 0x128   :  { %v2216_v0 = vpop.permute.xlu1 %1006  ;;  %v890_v5 = vpop.permute.xlu0 %889  ;;  %v795_v20 = vadd.f32 %v793_v12, %v786_v15  ;;  %v884_v22 = vadd.f32 %v882_v41, %v875_v29 }
 0x129   :  { %v891_v37 = vrot.slane %v890_v5, 6  ;;  %v1008_v62 = vrot.slane %v2216_v0, 2 }
 0x12b   :  { %v892_v56 = vsel %vm426_vm14, %v891_v37, %v890_v5 }
 0x12c   :  { %v910_v6 = vpop.permute.xlu1 %909  ;;  %v900_v10 = vpop.permute.xlu0 %899  ;;  %v894_v52 = vadd.f32 %v892_v56, %v884_v22 }
 0x12d   :  { %v901_v44 = vrot.slane %v900_v10, 6  ;;  %v911_v45 = vrot.slane %v910_v6, 6 }
 0x12f   :  { %v902_v48 = vsel %vm426_vm14, %v901_v44, %v900_v10  ;;  %v912_v57 = vsel %vm446_vm15, %v911_v45, %v910_v6  ;;  %v1009_v10 = vsel %vm388_vm12, %v2216_v0, %v1008_v62  ;;  %v1154_v62 = vstv %s1535_s15 }
 0x130   :  { %v826_v23 = vpop.permute.xlu1 %825  ;;  %v800_v25 = vpop.permute.xlu0 %799  ;;  %v904_v11 = vadd.f32 %v902_v48, %v894_v52 }
 0x131   :  { %v827_v49 = vrot.slane %v826_v23, 6  ;;  %v801_v17 = vrot.slane %v800_v25, 6 }
 0x132   :  { %v914_v14 = vadd.f32 %v912_v57, %v904_v11  ;;  %v1150_v11 = vstv %s1486_s14 }
 0x133   :  { %v829_v47 = vsel %vm828_vm4, %v827_v49, %v826_v23  ;;  %v802_v19 = vsel %vm485_vm1, %v801_v17, %v800_v25  ;;  %v1011_v23 = vadd.f32 %v1009_v10, %v1002_v39 }
 0x134   :  { %v804_v30 = vadd.f32 %v802_v19, %v795_v20  ;;  %v1025_v1 = vpop.permute.xlu1 %1024  ;;  %v1016_v3 = vpop.permute.xlu0 %1015 }
 0x135   :  { %v1017_v5 = vrot.slane %v1016_v3, 2  ;;  %v1026_v6 = vrot.slane %v1025_v1, 2 }
 0x136   :  { %v831_v36 = vmul.f32 %v829_v47, %v804_v30 }
 0x137   :  { %v1018_v12 = vsel %vm388_vm12, %v1016_v3, %v1017_v5  ;;  %v1027_v47 = vsel %vm407_vm13, %v1025_v1, %v1026_v6  ;;  %v1155_v5 = vmul.f32 %v1154_v62, %v1929_v16 }
 0x138   :  { %v1034_v34 = vpop.permute.xlu1 %1033  ;;  %v920_v24 = vpop.permute.xlu0 %919  ;;  %833 = vrot.lane.b32.xlu1 %v831_v36, %s1719_s2  ;;  %v1020_v20 = vadd.f32 %v1018_v12, %v1011_v23 }
 0x139   :  { %v921_v53 = vrot.slane %v920_v24, 6  ;;  %v1035_v19 = vrot.slane %v1034_v34, 2 }
 0x13a   :  { %v1029_v36 = vadd.f32 %v1027_v47, %v1020_v20 }
 0x13b   :  { %v922_v60 = vsel %vm446_vm15, %v921_v53, %v920_v24  ;;  %v1036_v33 = vsel %vm407_vm13, %v1034_v34, %v1035_v19 }
 0x13c   :  { %v1044_v61 = vpop.permute.xlu1 %1043  ;;  %v929_v31 = vpop.permute.xlu0 %928  ;;  %v924_v7 = vadd.f32 %v922_v60, %v914_v14  ;;  %v1038_v29 = vadd.f32 %v1036_v33, %v1029_v36 }
 0x13d   :  { %v930_v13 = vrot.slane %v929_v31, 6  ;;  %v1045_v35 = vrot.slane %v1044_v61, 6 }
 0x13f   :  { %v931_v32 = vsel %vm466_vm0, %v930_v13, %v929_v31  ;;  %v1046_v38 = vsel %vm426_vm14, %v1045_v35, %v1044_v61 }
 0x140   :  { %v1054_v2 = vpop.permute.xlu1 %1053  ;;  %v938_v59 = vpop.permute.xlu0 %937  ;;  %v933_v25 = vadd.f32 %v931_v32, %v924_v7  ;;  %v1048_v42 = vadd.f32 %v1046_v38, %v1038_v29 }
 0x141   :  { %v939_v8 = vrot.slane %v938_v59, 6  ;;  %v1055_v24 = vrot.slane %v1054_v2, 6 }
 0x143   :  { %v940_v15 = vsel %vm466_vm0, %v939_v8, %v938_v59  ;;  %v1056_v22 = vsel %vm426_vm14, %v1055_v24, %v1054_v2 }
 0x144   :  { %v956_v21 = vpop.permute.xlu1 %955  ;;  %v947_v63 = vpop.permute.xlu0 %946  ;;  %v942_v0 = vadd.f32 %v940_v15, %v933_v25  ;;  %v1058_v45 = vadd.f32 %v1056_v22, %v1048_v42 }
 0x145   :  { %v948_v51 = vrot.slane %v947_v63, 6  ;;  %v957_v49 = vrot.slane %v956_v21, 6 }
 0x147   :  { %v949_v17 = vsel %vm485_vm1, %v948_v51, %v947_v63  ;;  %v958_v46 = vsel %vm485_vm1, %v957_v49, %v956_v21  ;;  %v1151_v63 = vmul.f32 %v1150_v11, %v1931_v18 }
 0x148   :  { %v2241_v9 = vpop.permute.xlu1 %1169  ;;  %v2243_v4 = vpop.permute.xlu0 %1160  ;;  %v951_v30 = vadd.f32 %v949_v17, %v942_v0 }
 0x149   :  { %v1162_v39 = vrot.slane %v2243_v4, 2  ;;  %v1156_v51 = vadd.f32 %v1155_v5, %v1151_v63  ;;  %v1171_v18 = vrot.slane %v2241_v9, 2 }
 0x14a   :  { %v960_v37 = vadd.f32 %v958_v46, %v951_v30  ;;  %v1308_v46 = vstv %s1536_s16 }
 0x14b   :  { %v1163_v16 = vsel %vm388_vm12, %v2243_v4, %v1162_v39  ;;  %v1172_v19 = vsel %vm388_vm12, %v2241_v9, %v1171_v18  ;;  %v1309_v24 = vmul.f32 %v1308_v46, %v2017_v27 }
 0x14c   :  { %v1072_v28 = vpop.permute.xlu1 %1071  ;;  %v1063_v55 = vpop.permute.xlu0 %1062  ;;  %v1165_v0 = vadd.f32 %v1163_v16, %v1156_v51 }
 0x14d   :  { %v1064_v41 = vrot.slane %v1063_v55, 6  ;;  %v1073_v34 = vrot.slane %v1072_v28, 6 }
 0x14f   :  { %v1065_v43 = vsel %vm446_vm15, %v1064_v41, %v1063_v55  ;;  %v1074_v59 = vsel %vm446_vm15, %v1073_v34, %v1072_v28 }
 0x150   :  { %v1081_v3 = vpop.permute.xlu1 %1080  ;;  %v982_v26 = vpop.permute.xlu0 %981  ;;  %v1067_v52 = vadd.f32 %v1065_v43, %v1058_v45 }
 0x151   :  { %v983_v40 = vrot.slane %v982_v26, 6  ;;  %v1082_v53 = vrot.slane %v1081_v3, 6 }
 0x152   :  { %v1076_v57 = vadd.f32 %v1074_v59, %v1067_v52 }
 0x153   :  { %v984_v44 = vsel %vm426_vm14, %v983_v40, %v982_v26  ;;  %v1083_v13 = vsel %vm466_vm0, %v1082_v53, %v1081_v3  ;;  %v1174_v26 = vadd.f32 %v1172_v19, %v1165_v0 }
 0x154   :  { %v986_v1 = vmul.f32 %v984_v44, %v960_v37  ;;  %v1090_v31 = vpop.permute.xlu1 %1089  ;;  %v1179_v56 = vpop.permute.xlu0 %1178  ;;  %v1085_v10 = vadd.f32 %v1083_v13, %v1076_v57 }
 0x155   :  { %v1091_v2 = vrot.slane %v1090_v31, 6  ;;  %v1180_v49 = vrot.slane %v1179_v56, 2 }
 0x156   :  { %988 = vrot.lane.b32.xlu0 %v986_v1, %s1710_s13  ;;  %s1487_s13 = sld [smem:[#allocation10 + $0x6]] }
 0x157   :  { %v1092_v14 = vsel %vm466_vm0, %v1091_v2, %v1090_v31  ;;  %v1181_v4 = vsel %vm407_vm13, %v1179_v56, %v1180_v49 }
 0x158   :  { %v1099_v48 = vpop.permute.xlu1 %1098  ;;  %v1188_v61 = vpop.permute.xlu0 %1187  ;;  %v1094_v7 = vadd.f32 %v1092_v14, %v1085_v10  ;;  %v1183_v44 = vadd.f32 %v1181_v4, %v1174_v26 }
 0x159   :  { %v1100_v21 = vrot.slane %v1099_v48, 6  ;;  %v1189_v30 = vrot.slane %v1188_v61, 2 }
 0x15b   :  { %v1101_v32 = vsel %vm485_vm1, %v1100_v21, %v1099_v48  ;;  %v1190_v38 = vsel %vm407_vm13, %v1188_v61, %v1189_v30 }
 0x15c   :  { %v1315_v54 = vpop.permute.xlu1 %1314  ;;  %v1198_v58 = vpop.permute.xlu0 %1197  ;;  %v1103_v25 = vadd.f32 %v1101_v32, %v1094_v7  ;;  %v1304_v35 = vstv %s1487_s13  ;;  %v1192_v31 = vadd.f32 %v1190_v38, %v1183_v44 }
 0x15d   :  { %v1199_v3 = vrot.slane %v1198_v58, 6  ;;  %v1305_v33 = vmul.f32 %v1304_v35, %v1969_v50  ;;  %v1316_v41 = vrot.slane %v1315_v54, 2 }
 0x15f   :  { %v1200_v29 = vsel %vm426_vm14, %v1199_v3, %v1198_v58  ;;  %v1310_v56 = vadd.f32 %v1309_v24, %v1305_v33  ;;  %v1317_v50 = vsel %vm388_vm12, %v1315_v54, %v1316_v41 }
 0x160   :  { %v1217_v60 = vpop.permute.xlu1 %1216  ;;  %v1208_v8 = vpop.permute.xlu0 %1207  ;;  %v1202_v43 = vadd.f32 %v1200_v29, %v1192_v31 }
 0x161   :  { %v1209_v9 = vrot.slane %v1208_v8, 6  ;;  %v1218_v34 = vrot.slane %v1217_v60, 6  ;;  %v1319_v52 = vadd.f32 %v1317_v50, %v1310_v56 }
 0x163   :  { %v1210_v27 = vsel %vm426_vm14, %v1209_v9, %v1208_v8  ;;  %v1219_v58 = vsel %vm446_vm15, %v1218_v34, %v1217_v60  ;;  %v498_v34 = vld [vmem:[#allocation2] sm:$0xf] }
 0x164   :  { %v1134_v6 = vpop.permute.xlu1 %1133  ;;  %v1108_v12 = vpop.permute.xlu0 %1107  ;;  %v1212_v59 = vadd.f32 %v1210_v27, %v1202_v43 }
 0x165   :  { %v1135_v15 = vrot.slane %v1134_v6, 6  ;;  %v1109_v23 = vrot.slane %v1108_v12, 6 }
 0x166   :  { %v1221_v63 = vadd.f32 %v1219_v58, %v1212_v59 }
 0x167   :  { %v1137_v17 = vsel %vm1136_vm5, %v1135_v15, %v1134_v6  ;;  %v1110_v20 = vsel %vm485_vm1, %v1109_v23, %v1108_v12 }
 0x168   :  { %v1112_v28 = vadd.f32 %v1110_v20, %v1103_v25  ;;  %v1333_v55 = vpop.permute.xlu1 %1332  ;;  %v1324_v47 = vpop.permute.xlu0 %1323 }
 0x169   :  { %v1325_v1 = vrot.slane %v1324_v47, 2  ;;  %v1334_v45 = vrot.slane %v1333_v55, 2 }
 0x16a   :  { %v1139_v36 = vmul.f32 %v1137_v17, %v1112_v28 }
 0x16b   :  { %v1326_v48 = vsel %vm388_vm12, %v1324_v47, %v1325_v1  ;;  %v1335_v57 = vsel %vm407_vm13, %v1333_v55, %v1334_v45  ;;  %vm1298_vm12 = vcmask 375808  }
 0x16c   :  { %v1342_v40 = vpop.permute.xlu1 %1341  ;;  %v1226_v37 = vpop.permute.xlu0 %1225  ;;  %1141 = vrot.lane.b32.xlu1 %v1139_v36, %s1720_s18  ;;  %v1328_v2 = vadd.f32 %v1326_v48, %v1319_v52 }
 0x16d   :  { %v1227_v61 = vrot.slane %v1226_v37, 6  ;;  %v1343_v13 = vrot.slane %v1342_v40, 2 }
 0x16e   :  { %v1337_v32 = vadd.f32 %v1335_v57, %v1328_v2 }
 0x16f   :  { %v1228_v54 = vsel %vm446_vm15, %v1227_v61, %v1226_v37  ;;  %v1344_v7 = vsel %vm407_vm13, %v1342_v40, %v1343_v13  ;;  %vm1452_vm13 = vcmask 367616  }
 0x170   :  { %v1352_v22 = vpop.permute.xlu1 %1351  ;;  %v1235_v42 = vpop.permute.xlu0 %1234  ;;  %v1230_v51 = vadd.f32 %v1228_v54, %v1221_v63  ;;  %v1346_v17 = vadd.f32 %v1344_v7, %v1337_v32 }
 0x171   :  { %v1236_v62 = vrot.slane %v1235_v42, 6  ;;  %v1353_v39 = vrot.slane %v1352_v22, 6 }
 0x173   :  { %v1237_v14 = vsel %vm466_vm0, %v1236_v62, %v1235_v42  ;;  %v1354_v15 = vsel %vm426_vm14, %v1353_v39, %v1352_v22 }
 0x174   :  { %v1362_v53 = vpop.permute.xlu1 %1361  ;;  %v1244_v11 = vpop.permute.xlu0 %1243  ;;  %v1239_v12 = vadd.f32 %v1237_v14, %v1230_v51  ;;  %v1356_v47 = vadd.f32 %v1354_v15, %v1346_v17 }
 0x175   :  { %v1245_v21 = vrot.slane %v1244_v11, 6  ;;  %v1363_v60 = vrot.slane %v1362_v53, 6 }
 0x177   :  { %v1246_v6 = vsel %vm466_vm0, %v1245_v21, %v1244_v11  ;;  %v1364_v0 = vsel %vm426_vm14, %v1363_v60, %v1362_v53 }
 0x178   :  { %v1371_v5 = vpop.permute.xlu1 %1370  ;;  %v1253_v8 = vpop.permute.xlu0 %1252  ;;  %v1248_v20 = vadd.f32 %v1246_v6, %v1239_v12  ;;  %v1366_v4 = vadd.f32 %v1364_v0, %v1356_v47 }
 0x179   :  { %v1254_v10 = vrot.slane %v1253_v8, 6  ;;  %v1372_v23 = vrot.slane %v1371_v5, 6 }
 0x17b   :  { %v1255_v25 = vsel %vm485_vm1, %v1254_v10, %v1253_v8  ;;  %v1373_v46 = vsel %vm446_vm15, %v1372_v23, %v1371_v5 }
 0x17c   :  { %v1380_v18 = vpop.permute.xlu1 %1379  ;;  %v1262_v16 = vpop.permute.xlu0 %1261  ;;  %v1257_v19 = vadd.f32 %v1255_v25, %v1248_v20  ;;  %v1375_v24 = vadd.f32 %v1373_v46, %v1366_v4 }
 0x17d   :  { %v1263_v49 = vrot.slane %v1262_v16, 6  ;;  %v1381_v28 = vrot.slane %v1380_v18, 6 }
 0x17f   :  { %v1264_v55 = vsel %vm485_vm1, %v1263_v49, %v1262_v16  ;;  %v1382_v26 = vsel %vm446_vm15, %v1381_v28, %v1380_v18 }
 0x180   :  { %v1398_v30 = vpop.permute.xlu1 %1397  ;;  %v1288_v35 = vpop.permute.xlu0 %1287  ;;  %v1266_v3 = vadd.f32 %v1264_v55, %v1257_v19  ;;  %v1384_v44 = vadd.f32 %v1382_v26, %v1375_v24 }
 0x181   :  { %v1289_v36 = vrot.slane %v1288_v35, 6  ;;  %v1399_v41 = vrot.slane %v1398_v30, 6 }
 0x183   :  { %v1291_v33 = vsel %vm1290_vm6, %v1289_v36, %v1288_v35  ;;  %v1400_v22 = vsel %vm466_vm0, %v1399_v41, %v1398_v30 }
 0x184   :  { %v1293_v40 = vmul.f32 %v1291_v33, %v1266_v3  ;;  %v1416_v37 = vpop.permute.xlu1 %1415  ;;  %v1389_v38 = vpop.permute.xlu0 %1388 }
 0x185   :  { %v1390_v9 = vrot.slane %v1389_v38, 6  ;;  %v1417_v42 = vrot.slane %v1416_v37, 6 }
 0x186   :  { %1295 = vrot.lane.b32.xlu0 %v1293_v40, %s1721_s19 }
 0x187   :  { %v1391_v29 = vsel %vm466_vm0, %v1390_v9, %v1389_v38  ;;  %v1418_v53 = vsel %vm485_vm1, %v1417_v42, %v1416_v37 }
 0x188   :  { %v1393_v1 = vadd.f32 %v1391_v29, %v1384_v44  ;;  %v1407_v31 = vpop.permute.xlu0 %1406  ;;  %v526_v56 = vpop.permute.xlu1 %525 }
 0x189   :  { %v1408_v50 = vrot.slane %v1407_v31, 6  ;;  %v527_v27 = vrot.slane %v526_v56, 2 }
 0x18a   :  { %v1402_v43 = vadd.f32 %v1400_v22, %v1393_v1 }
 0x18b   :  { %v1409_v45 = vsel %vm485_vm1, %v1408_v50, %v1407_v31  ;;  %v529_v48 = vsel %vm528_vm7, %v526_v56, %v527_v27 }
 0x18c   :  { %v1411_v61 = vadd.f32 %v1409_v45, %v1402_v43  ;;  %v531_v52 = vadd.f32 %v529_v48, %v498_v34  ;;  %v1442_v59 = vpop.permute.xlu0 %1441 }
 0x18d   :  { %v1443_v11 = vrot.slane %v1442_v59, 6 }
 0x18e   :  { %532 = vst [vmem:[#allocation2] sm:$0xf] %v531_v52  ;;  %v1420_v58 = vadd.f32 %v1418_v53, %v1411_v61 }
 0x18f   :  { %v1445_v62 = vsel %vm1444_vm8, %v1443_v11, %v1442_v59 }
 0x190   :  { %v1447_v2 = vmul.f32 %v1445_v62, %v1420_v58 }
 0x192   :  { %1449 = vrot.lane.b32.xlu1 %v1447_v2, %s1722_s22 }
 0x194   :  { %v680_v57 = vpop.permute.xlu0 %679 }
 0x195   :  { %v681_v13 = vrot.slane %v680_v57, 2  ;;  %v651_v54 = vld [vmem:[#allocation2] sm:$0xf] }
 0x197   :  { %v683_v21 = vsel %vm682_vm9, %v680_v57, %v681_v13 }
 0x198   :  { %v685_v63 = vadd.f32 %v683_v21, %v651_v54 }
 0x19a   :  { %686 = vst [vmem:[#allocation2] sm:$0xf] %v685_v63 }
 0x1a1   :  { %v805_v39 = vld [vmem:[#allocation2] sm:$0xf] }
 0x1aa   :  { %v834_v5 = vpop.permute.xlu1 %833 }
 0x1ab   :  { %v835_v8 = vrot.slane %v834_v5, 2 }
 0x1ad   :  { %v837_v14 = vsel %vm836_vm10, %v834_v5, %v835_v8 }
 0x1ae   :  { %v839_v10 = vadd.f32 %v837_v14, %v805_v39 }
 0x1b0   :  { %840 = vst [vmem:[#allocation2] sm:$0xf] %v839_v10 }
 0x1b7   :  { %v961_v7 = vld [vmem:[#allocation2] sm:$0xf] }
 0x1c8   :  { %v989_v32 = vpop.permute.xlu0 %988 }
 0x1c9   :  { %v990_v51 = vrot.slane %v989_v32, 2 }
 0x1cb   :  { %v991_v60 = vsel %vm466_vm0, %v989_v32, %v990_v51 }
 0x1cc   :  { %v993_v6 = vadd.f32 %v991_v60, %v961_v7 }
 0x1ce   :  { %994 = vst [vmem:[#allocation2] sm:$0xf] %v993_v6 }
 0x1d5   :  { %v1113_v16 = vld [vmem:[#allocation2] sm:$0xf] }
 0x1de   :  { %v1142_v12 = vpop.permute.xlu1 %1141 }
 0x1df   :  { %v1143_v18 = vrot.slane %v1142_v12, 2 }
 0x1e1   :  { %v1145_v15 = vsel %vm1144_vm11, %v1142_v12, %v1143_v18 }
 0x1e2   :  { %v1147_v23 = vadd.f32 %v1145_v15, %v1113_v16 }
 0x1e4   :  { %1148 = vst [vmem:[#allocation2] sm:$0xf] %v1147_v23 }
 0x1eb   :  { %v1267_v17 = vld [vmem:[#allocation2] sm:$0xf] }
 0x1f8   :  { %v1296_v25 = vpop.permute.xlu0 %1295 }
 0x1f9   :  { %v1297_v49 = vrot.slane %v1296_v25, 2 }
 0x1fb   :  { %v1299_v20 = vsel %vm1298_vm12, %v1296_v25, %v1297_v49 }
 0x1fc   :  { %v1301_v0 = vadd.f32 %v1299_v20, %v1267_v17 }
 0x1fe   :  { %1302 = vst [vmem:[#allocation2] sm:$0xf] %v1301_v0 }
 0x204   :  { %v1450_v28 = vpop.permute.xlu1 %1449 }
 0x205   :  { %v1451_v55 = vrot.slane %v1450_v28, 2  ;;  %v1421_v47 = vld [vmem:[#allocation2] sm:$0xf] }
 0x207   :  { %v1453_v19 = vsel %vm1452_vm13, %v1450_v28, %v1451_v55 }
 0x208   :  { %v1455_v30 = vadd.f32 %v1453_v19, %v1421_v47 }
 0x20a   :  { %1456 = vst [vmem:[#allocation2] sm:$0xf] %v1455_v30 }
 0x211   :  { %v1457_v35 = vld [vmem:[#allocation2] sm:$0xf] }
 0x212   :  { %v1579_v46 = vmul.f32 -1.442695, %v1457_v35 }
 0x214   :  { %1608 = vpow2.f32 %v1579_v46 }
 0x21e   :  { %v1609_v36 = vpop.eup %1608 }
 0x21f   :  { %v1461_v4 = vadd.f32 1.0, %v1609_v36 }
 0x221   :  { %1610 = vrcp.f32 %v1461_v4 }
 0x22b   :  { %v1611_v3 = vpop.eup %1610 }
 0x22c   :  { %1464 = vst [vmem:[#allocation13] sm:$0xf] %v1611_v3 }
 0x22d   :  { %1679 = shalt.err (!%p1676_p11)
}
 0x22e   :  { %s1680_s27 = scalar_lea.hbm %s2309_s3, 64 }
 0x22f   :  { %p1681_p12 = scmp.ne.s32.totalorder %s2309_s3, %s1680_s27  ;;  %p1684_p13 = scmp.lt.u32.totalorder %s1680_s27, %s2309_s3 }
 0x231   :  { %p1686_p0 = pnand %p1684_p13, %p1681_p12 }
 0x233   :  { %1689 = shalt.err (!%p1686_p0)
}
 0x234   :  { %1474 = dma.vmem_to_hbm [thread:$0]  %s1472_s24, 64, %s2309_s3, [#allocation8]  }
 0x235   :  { %1696 = dma.done.wait [#allocation8], 64  }
 0x236   :  { %1697 = vsyncadd [#allocation8], 4294967232 }
 0x237   :  { %1478 = vsyncpa [#allocation7], 1 }
 0x238   :  { %1479 = vsyncpa [#allocation12], 1 }
 0x239   :  { %1480 = vsyncpa [#allocation8], 1 }
 0x23a   :  { %1481 = vsyncpa [#allocation9], 1 }

</bundles_post_ra>
